<compile_context>
chip_gen: v5e
topology: v5e:2x2
jax: 0.10.0
libtpu: 0.0.40
codegen_flags: <defaults>
</compile_context>

<pallas_src>
import math
import functools

import numpy as np
import jax
import jax.numpy as jnp
from jax.experimental import pallas as pl
from jax.experimental.pallas import tpu as pltpu

EPS = 1e-5  # torch.nn.LayerNorm default


def _layer_norm(x, g, b):
    mu = jnp.mean(x, axis=-1, keepdims=True)
    xc = x - mu
    var = jnp.mean(xc * xc, axis=-1, keepdims=True)
    return xc * jax.lax.rsqrt(var + EPS) * g + b


# ----------------------------- fused Pallas kernel ---------------------------

def fused_encoder_kernel(x_ref, bias_ref, lne_g_ref, lne_b_ref,
                         wqkv_ref, bqkv_ref, wo_ref, bo_ref,
                         ln1_g_ref, ln1_b_ref,
                         wf1_ref, bf1_ref, wf2_ref, bf2_ref,
                         ln2_g_ref, ln2_b_ref, o_ref,
                         *, num_heads, num_layers):
    """layernorm_embedding + `num_layers` post-norm encoder layers for ONE batch
    element (grid axis 0 = batch).

    x_ref:    (S, E) token embeddings * sqrt(E) + positions.
    bias_ref: (1, S) additive key-padding bias (0 keep / -1e9 masked).
    wqkv:     (L, E, 3E)  q|k|v concatenated, q scaling pre-folded.
    wo/wf1/wf2: per-layer full-width weights; ln*/b* per-layer (1, dim) rows.
    """
    S, E = x_ref.shape
    H, L = num_heads, num_layers
    D = E // H

    # --- layernorm_embedding (all dropouts are identity in eval mode) ---
    x2 = _layer_norm(x_ref[...], lne_g_ref[...], lne_b_ref[...])          # (S, E)

    # --- key-padding additive bias, pre-broadcast ONCE to score shape ---
    bias = jnp.broadcast_to(bias_ref[...], (S, S))                        # (S, S)

    for l in range(L):
        # ---------------- self-attention (post-norm) ----------------
        # fused full-width QKV projection: one (S,E)x(E,3E) MXU matmul
        qkv = jnp.dot(x2, wqkv_ref[l], preferred_element_type=jnp.float32) \
            + bqkv_ref[l]                                                  # (S, 3E)

        heads = []
        for h in range(H):
            qh = qkv[:, h * D:(h + 1) * D]                    # (S, D) static lane slice
            kh = qkv[:, E + h * D:E + (h + 1) * D]
            vh = qkv[:, 2 * E + h * D:2 * E + (h + 1) * D]
            # scores = q @ k^T  (q scaling already folded into wqkv)
            s = jax.lax.dot_general(qh, kh, (((1,), (1,)), ((), ())),
                                    preferred_element_type=jnp.float32)   # (S, S)
            s = s + bias          # == masked_fill(key_padding_mask, -1e9)
            p = jnp.exp(s - jnp.max(s, axis=-1, keepdims=True))
            p = p * pl.reciprocal(jnp.sum(p, axis=-1, keepdims=True), approx=True)
            heads.append(jnp.dot(p, vh, preferred_element_type=jnp.float32))  # (S, D)

        # lane-concat the per-head outputs and do ONE out-proj matmul
        a = jnp.concatenate(heads, axis=-1)                                # (S, E)
        attn = jnp.dot(a, wo_ref[l], preferred_element_type=jnp.float32) + bo_ref[l]

        # residual + self_attn_layer_norm (normalize_before=False -> post-norm)
        x2 = _layer_norm(x2 + attn, ln1_g_ref[l], ln1_b_ref[l])

        # ---------------- feed-forward ----------------
        h1 = jnp.dot(x2, wf1_ref[l], preferred_element_type=jnp.float32) + bf1_ref[l]
        h1 = jnp.maximum(h1, 0.0)             # activation_function = 'relu'
        h2 = jnp.dot(h1, wf2_ref[l], preferred_element_type=jnp.float32) + bf2_ref[l]
        x2 = _layer_norm(x2 + h2, ln2_g_ref[l], ln2_b_ref[l])
        # TODO(synk): torch's conditional isinf/isnan clamp is identity for finite
        # activations and is skipped here.

    o_ref[...] = x2


# ------------------------------- wrappers ------------------------------------

def _resident_spec(arr):
    """Whole-array VMEM block with a constant index_map (stays resident across grid)."""
    zeros = (0,) * arr.ndim
    return pl.BlockSpec(arr.shape, lambda b: zeros)


def run_fused_encoder(x, bias, prep, *, num_heads, num_layers):
    B, S, E = x.shape
    weight_names = ('lne_g', 'lne_b', 'wqkv', 'bqkv', 'wo', 'bo',
                    'ln1_g', 'ln1_b', 'wf1', 'bf1', 'wf2', 'bf2',
                    'ln2_g', 'ln2_b')
    weights = tuple(prep[n] for n in weight_names)

    kernel = functools.partial(fused_encoder_kernel,
                               num_heads=num_heads, num_layers=num_layers)

    in_specs = [
        pl.BlockSpec((None, S, E), lambda b: (b, 0, 0)),   # x: one batch element per step
        pl.BlockSpec((None, 1, S), lambda b: (b, 0, 0)),   # additive mask bias per batch
    ] + [_resident_spec(w) for w in weights]

    return pl.pallas_call(
        kernel,
        out_shape=jax.ShapeDtypeStruct((B, S, E), jnp.float32),
        grid=(B,),
        in_specs=in_specs,
        out_specs=pl.BlockSpec((None, S, E), lambda b: (b, 0, 0)),
        compiler_params=pltpu.CompilerParams(
            dimension_semantics=("parallel",)),   # batch -> both TCs on v7x
    )(x, bias, *weights)


def prepare_params(params):
    """One-time parameter transform: stack layers, fuse QKV, fold scales."""
    E = params['emb'].shape[1]
    H = params['num_heads']
    D = E // H
    scaling = D ** -0.5

    def stack(name):
        return jnp.stack([lp[name] for lp in params['layers']], axis=0)

    wq = stack('wq') * scaling            # fold q scaling into the weights (one-time)
    bq = stack('bq') * scaling
    wqkv = jnp.concatenate([wq, stack('wk'), stack('wv')], axis=-1)   # (L, E, 3E)
    bqkv = jnp.concatenate([bq, stack('bk'), stack('bv')], axis=-1)   # (L, 1, 3E)

    return {
        'lne_g': params['ln_emb_g'], 'lne_b': params['ln_emb_b'],
        'wqkv': wqkv, 'bqkv': bqkv,
        'wo': stack('wo'), 'bo': stack('bo'),
        'ln1_g': stack('ln1_g'), 'ln1_b': stack('ln1_b'),
        'wf1': stack('wf1'), 'bf1': stack('bf1'),
        'wf2': stack('wf2'), 'bf2': stack('bf2'),
        'ln2_g': stack('ln2_g'), 'ln2_b': stack('ln2_b'),
        'emb_scaled': params['emb'] * math.sqrt(E),   # fold sqrt(E) embed scale
        'pos': params['pos'],
    }


def sinusoidal_table(n_pos, dim):
    # identical to SinusoidalPositionalEmbedding._init_weight
    pe = np.array([[pos / np.power(10000, 2 * (j // 2) / dim) for j in range(dim)]
                   for pos in range(n_pos)], dtype=np.float64)
    w = np.zeros((n_pos, dim), dtype=np.float32)
    w[:, :dim // 2] = np.sin(pe[:, 0::2])
    w[:, dim // 2:] = np.cos(pe[:, 1::2])
    return jnp.asarray(w)


def transformer_encoder_forward(input_ids, attention_mask, prep, *, num_heads, num_layers):
    """Full TransformerEncoder forward (eval mode); one fused Pallas call."""
    B, S = input_ids.shape
    # Embedding gather + positional add left to XLA; everything downstream is
    # a single fused Pallas kernel.
    x = jnp.take(prep['emb_scaled'], input_ids, axis=0) + prep['pos'][:S][None, :, :]
    # key_padding_mask -> additive bias (computed once, outside the kernel)
    bias = jnp.where(attention_mask > 0.5, -1e9, 0.0).astype(jnp.float32).reshape(B, 1, S)
    return run_fused_encoder(x, bias, prep, num_heads=num_heads, num_layers=num_layers)


# ------------------------ pure-JAX reference (for checking) ------------------

def reference_forward(input_ids, attention_mask, params):
    B, S = input_ids.shape
    E = params['emb'].shape[1]
    H = params['num_heads']
    D = E // H
    x = jnp.take(params['emb'], input_ids, axis=0) * math.sqrt(E) + params['pos'][:S][None]
    x = _layer_norm(x, params['ln_emb_g'], params['ln_emb_b'])
    pad = attention_mask > 0.5                                   # (B, S)
    for lp in params['layers']:
        q = (x @ lp['wq'] + lp['bq']) * (D ** -0.5)
        k = x @ lp['wk'] + lp['bk']
        v = x @ lp['wv'] + lp['bv']
        q = q.reshape(B, S, H, D).transpose(0, 2, 1, 3)
        k = k.reshape(B, S, H, D).transpose(0, 2, 1, 3)
        v = v.reshape(B, S, H, D).transpose(0, 2, 1, 3)
        s = jnp.einsum('bhqd,bhkd->bhqk', q, k)
        s = jnp.where(pad[:, None, None, :], -1e9, s)
        probs = jax.nn.softmax(s, axis=-1)
        o = jnp.einsum('bhqk,bhkd->bhqd', probs, v).transpose(0, 2, 1, 3).reshape(B, S, E)
        o = o @ lp['wo'] + lp['bo']
        x = _layer_norm(x + o, lp['ln1_g'], lp['ln1_b'])
        hfc = jnp.maximum(x @ lp['wf1'] + lp['bf1'], 0.0)
        hfc = hfc @ lp['wf2'] + lp['bf2']
        x = _layer_norm(x + hfc, lp['ln2_g'], lp['ln2_b'])
    return x


# --------------------------------- main ---------------------------------------

if __name__ == "__main__":
    key = jax.random.PRNGKey(0)
    B, S = 2, 8
    VOCAB, E, H, FFN, L = 50, 32, 4, 64, 2
    MAX_POS, PAD_IDX = 16, 1

    n_keys = 2 + L * 12
    keys = jax.random.split(key, n_keys)
    ki = 0

    emb = jax.random.normal(keys[ki], (VOCAB, E), jnp.float32) * 0.02; ki += 1
    emb = emb.at[PAD_IDX].set(0.0)   # nn.Embedding(padding_idx=...) zeros that row

    params = {
        'emb': emb,
        'pos': sinusoidal_table(MAX_POS, E),
        'ln_emb_g': jnp.ones((1, E), jnp.float32),
        'ln_emb_b': jnp.zeros((1, E), jnp.float32),
        'num_heads': H,
        'layers': [],
    }

    for _ in range(L):
        p = {}
        for name, (din, dout) in [('q', (E, E)), ('k', (E, E)), ('v', (E, E)),
                                  ('o', (E, E)), ('f1', (E, FFN)), ('f2', (FFN, E))]:
            p['w' + name] = jax.random.normal(keys[ki], (din, dout), jnp.float32) * 0.02; ki += 1
            p['b' + name] = jax.random.normal(keys[ki], (1, dout), jnp.float32) * 0.02; ki += 1
        p['ln1_g'] = jnp.ones((1, E), jnp.float32)
        p['ln1_b'] = jnp.zeros((1, E), jnp.float32)
        p['ln2_g'] = jnp.ones((1, E), jnp.float32)
        p['ln2_b'] = jnp.zeros((1, E), jnp.float32)
        params['layers'].append(p)

    input_ids = jax.random.randint(keys[ki], (B, S), 2, VOCAB); ki += 1
    # key_padding_mask: 1.0 = padding (masked out). Pad the last two tokens of batch 1.
    attention_mask = jnp.zeros((B, S), jnp.float32).at[1, S - 2:].set(1.0)

    prep = prepare_params(params)          # one-time: stack layers / fuse QKV / fold scales
    forward = jax.jit(functools.partial(transformer_encoder_forward,
                                        num_heads=H, num_layers=L))

    out = jax.block_until_ready(forward(input_ids, attention_mask, prep))

    assert out.shape == (B, S, E)
    assert bool(jnp.isfinite(out).all())
    ref = reference_forward(input_ids, attention_mask, params)
    max_err = float(jnp.max(jnp.abs(out - ref)))
    assert max_err < 2e-2, f"kernel vs reference mismatch: max abs err = {max_err}"
    print("KERNEL_OK")
</pallas_src>

<mosaic_0001>
module attributes {stable_mosaic.version = 11 : i64} {
  func.func @fused_encoder_kernel(%arg0: i32, %arg1: memref<1x8x32xf32, #tpu.memory_space<vmem>>, %arg2: memref<1x1x8xf32, #tpu.memory_space<vmem>>, %arg3: memref<1x32xf32, #tpu.memory_space<vmem>>, %arg4: memref<1x32xf32, #tpu.memory_space<vmem>>, %arg5: memref<2x32x96xf32, #tpu.memory_space<vmem>>, %arg6: memref<2x1x96xf32, #tpu.memory_space<vmem>>, %arg7: memref<2x32x32xf32, #tpu.memory_space<vmem>>, %arg8: memref<2x1x32xf32, #tpu.memory_space<vmem>>, %arg9: memref<2x1x32xf32, #tpu.memory_space<vmem>>, %arg10: memref<2x1x32xf32, #tpu.memory_space<vmem>>, %arg11: memref<2x32x64xf32, #tpu.memory_space<vmem>>, %arg12: memref<2x1x64xf32, #tpu.memory_space<vmem>>, %arg13: memref<2x64x32xf32, #tpu.memory_space<vmem>>, %arg14: memref<2x1x32xf32, #tpu.memory_space<vmem>>, %arg15: memref<2x1x32xf32, #tpu.memory_space<vmem>>, %arg16: memref<2x1x32xf32, #tpu.memory_space<vmem>>, %arg17: memref<1x8x32xf32, #tpu.memory_space<vmem>>) attributes {dimension_semantics = [#tpu.dimension_semantics<parallel>], iteration_bounds = array<i64: 2>, scalar_prefetch = 0 : i64, scratch_operands = 0 : i64, tpu.core_type = #tpu.core_type<tc>, window_params = [{transform_indices = @transform_0, window_bounds = array<i64: 1, 8, 32>}, {transform_indices = @transform_1, window_bounds = array<i64: 1, 1, 8>}, {pipeline_mode = #tpu.pipeline_mode<synchronous>, transform_indices = @transform_2, window_bounds = array<i64: 1, 32>}, {pipeline_mode = #tpu.pipeline_mode<synchronous>, transform_indices = @transform_3, window_bounds = array<i64: 1, 32>}, {pipeline_mode = #tpu.pipeline_mode<synchronous>, transform_indices = @transform_4, window_bounds = array<i64: 2, 32, 96>}, {pipeline_mode = #tpu.pipeline_mode<synchronous>, transform_indices = @transform_5, window_bounds = array<i64: 2, 1, 96>}, {pipeline_mode = #tpu.pipeline_mode<synchronous>, transform_indices = @transform_6, window_bounds = array<i64: 2, 32, 32>}, {pipeline_mode = #tpu.pipeline_mode<synchronous>, transform_indices = @transform_7, window_bounds = array<i64: 2, 1, 32>}, {pipeline_mode = #tpu.pipeline_mode<synchronous>, transform_indices = @transform_8, window_bounds = array<i64: 2, 1, 32>}, {pipeline_mode = #tpu.pipeline_mode<synchronous>, transform_indices = @transform_9, window_bounds = array<i64: 2, 1, 32>}, {pipeline_mode = #tpu.pipeline_mode<synchronous>, transform_indices = @transform_10, window_bounds = array<i64: 2, 32, 64>}, {pipeline_mode = #tpu.pipeline_mode<synchronous>, transform_indices = @transform_11, window_bounds = array<i64: 2, 1, 64>}, {pipeline_mode = #tpu.pipeline_mode<synchronous>, transform_indices = @transform_12, window_bounds = array<i64: 2, 64, 32>}, {pipeline_mode = #tpu.pipeline_mode<synchronous>, transform_indices = @transform_13, window_bounds = array<i64: 2, 1, 32>}, {pipeline_mode = #tpu.pipeline_mode<synchronous>, transform_indices = @transform_14, window_bounds = array<i64: 2, 1, 32>}, {pipeline_mode = #tpu.pipeline_mode<synchronous>, transform_indices = @transform_15, window_bounds = array<i64: 2, 1, 32>}, {transform_indices = @transform_16, window_bounds = array<i64: 1, 8, 32>}]} {
    %c0 = arith.constant 0 : index
    %c0_0 = arith.constant 0 : index
    %c0_1 = arith.constant 0 : index
    %0 = vector.load %arg1[%c0, %c0_0, %c0_1] : memref<1x8x32xf32, #tpu.memory_space<vmem>>, vector<1x8x32xf32>
    %1 = vector.shape_cast %0 : vector<1x8x32xf32> to vector<8x32xf32>
    %c0_2 = arith.constant 0 : index
    %c0_3 = arith.constant 0 : index
    %2 = vector.load %arg3[%c0_2, %c0_3] : memref<1x32xf32, #tpu.memory_space<vmem>>, vector<1x32xf32>
    %c0_4 = arith.constant 0 : index
    %c0_5 = arith.constant 0 : index
    %3 = vector.load %arg4[%c0_4, %c0_5] : memref<1x32xf32, #tpu.memory_space<vmem>>, vector<1x32xf32>
    %cst = arith.constant dense<0.000000e+00> : vector<8xf32>
    %4 = vector.multi_reduction <add>, %1, %cst [1] : vector<8x32xf32> to vector<8xf32>
    %5 = vector.shape_cast %4 : vector<8xf32> to vector<8x1xf32>
    %cst_6 = arith.constant 3.200000e+01 : f32
    %6 = vector.broadcast %cst_6 : f32 to vector<8x1xf32>
    %7 = arith.divf %5, %6 : vector<8x1xf32>
    %8 = vector.broadcast %7 : vector<8x1xf32> to vector<8x32xf32>
    %9 = arith.subf %1, %8 : vector<8x32xf32>
    %10 = arith.mulf %9, %9 : vector<8x32xf32>
    %cst_7 = arith.constant dense<0.000000e+00> : vector<8xf32>
    %11 = vector.multi_reduction <add>, %10, %cst_7 [1] : vector<8x32xf32> to vector<8xf32>
    %12 = vector.shape_cast %11 : vector<8xf32> to vector<8x1xf32>
    %cst_8 = arith.constant 3.200000e+01 : f32
    %13 = vector.broadcast %cst_8 : f32 to vector<8x1xf32>
    %14 = arith.divf %12, %13 : vector<8x1xf32>
    %cst_9 = arith.constant 9.99999974E-6 : f32
    %15 = vector.broadcast %cst_9 : f32 to vector<8x1xf32>
    %16 = arith.addf %14, %15 : vector<8x1xf32>
    %17 = math.rsqrt %16 : vector<8x1xf32>
    %18 = vector.broadcast %17 : vector<8x1xf32> to vector<8x32xf32>
    %19 = arith.mulf %9, %18 : vector<8x32xf32>
    %20 = vector.broadcast %2 : vector<1x32xf32> to vector<8x32xf32>
    %21 = arith.mulf %19, %20 : vector<8x32xf32>
    %22 = vector.broadcast %3 : vector<1x32xf32> to vector<8x32xf32>
    %23 = arith.addf %21, %22 : vector<8x32xf32>
    %c0_10 = arith.constant 0 : index
    %c0_11 = arith.constant 0 : index
    %c0_12 = arith.constant 0 : index
    %24 = vector.load %arg2[%c0_10, %c0_11, %c0_12] : memref<1x1x8xf32, #tpu.memory_space<vmem>>, vector<1x1x8xf32>
    %25 = vector.shape_cast %24 : vector<1x1x8xf32> to vector<1x8xf32>
    %26 = vector.shape_cast %25 : vector<1x8xf32> to vector<1x8xf32>
    %27 = vector.broadcast %26 : vector<1x8xf32> to vector<8x8xf32>
    %c0_13 = arith.constant 0 : index
    %c0_14 = arith.constant 0 : index
    %c0_15 = arith.constant 0 : index
    %28 = vector.load %arg5[%c0_13, %c0_14, %c0_15] : memref<2x32x96xf32, #tpu.memory_space<vmem>>, vector<1x32x96xf32>
    %29 = vector.shape_cast %28 : vector<1x32x96xf32> to vector<32x96xf32>
    %cst_16 = arith.constant dense<0.000000e+00> : vector<8x96xf32>
    %30 = tpu.matmul %23, %29, %cst_16 {dimension_numbers = #tpu.dot_dimension_numbers<[1], [0], [0], [1], [0, 0, 1, 1], [], []>} : vector<8x32xf32>, vector<32x96xf32>, vector<8x96xf32> -> vector<8x96xf32>
    %c0_17 = arith.constant 0 : index
    %c0_18 = arith.constant 0 : index
    %c0_19 = arith.constant 0 : index
    %31 = vector.load %arg6[%c0_17, %c0_18, %c0_19] : memref<2x1x96xf32, #tpu.memory_space<vmem>>, vector<1x1x96xf32>
    %32 = vector.shape_cast %31 : vector<1x1x96xf32> to vector<1x96xf32>
    %33 = vector.broadcast %32 : vector<1x96xf32> to vector<8x96xf32>
    %34 = arith.addf %30, %33 : vector<8x96xf32>
    %35 = vector.extract_strided_slice %34 {offsets = [0, 0], sizes = [8, 8], strides = [1, 1]} : vector<8x96xf32> to vector<8x8xf32>
    %36 = vector.extract_strided_slice %34 {offsets = [0, 32], sizes = [8, 8], strides = [1, 1]} : vector<8x96xf32> to vector<8x8xf32>
    %37 = vector.extract_strided_slice %34 {offsets = [0, 64], sizes = [8, 8], strides = [1, 1]} : vector<8x96xf32> to vector<8x8xf32>
    %cst_20 = arith.constant dense<0.000000e+00> : vector<8x8xf32>
    %38 = tpu.matmul %35, %36, %cst_20 {dimension_numbers = #tpu.dot_dimension_numbers<[1], [1], [0], [0], [0, 0, 1, 0], [], []>} : vector<8x8xf32>, vector<8x8xf32>, vector<8x8xf32> -> vector<8x8xf32>
    %39 = arith.addf %38, %27 : vector<8x8xf32>
    %cst_21 = arith.constant dense<0xFF800000> : vector<8xf32>
    %40 = vector.multi_reduction <maximumf>, %39, %cst_21 [1] : vector<8x8xf32> to vector<8xf32>
    %41 = vector.shape_cast %40 : vector<8xf32> to vector<8x1xf32>
    %42 = vector.broadcast %41 : vector<8x1xf32> to vector<8x8xf32>
    %43 = arith.subf %39, %42 : vector<8x8xf32>
    %44 = math.exp %43 : vector<8x8xf32>
    %cst_22 = arith.constant dense<0.000000e+00> : vector<8xf32>
    %45 = vector.multi_reduction <add>, %44, %cst_22 [1] : vector<8x8xf32> to vector<8xf32>
    %46 = vector.shape_cast %45 : vector<8xf32> to vector<8x1xf32>
    %47 = tpu.reciprocal %46 {approx = true} : vector<8x1xf32> -> vector<8x1xf32>
    %48 = vector.broadcast %47 : vector<8x1xf32> to vector<8x8xf32>
    %49 = arith.mulf %44, %48 : vector<8x8xf32>
    %cst_23 = arith.constant dense<0.000000e+00> : vector<8x8xf32>
    %50 = tpu.matmul %49, %37, %cst_23 {dimension_numbers = #tpu.dot_dimension_numbers<[1], [0], [0], [1], [0, 0, 1, 1], [], []>} : vector<8x8xf32>, vector<8x8xf32>, vector<8x8xf32> -> vector<8x8xf32>
    %51 = vector.extract_strided_slice %34 {offsets = [0, 8], sizes = [8, 8], strides = [1, 1]} : vector<8x96xf32> to vector<8x8xf32>
    %52 = vector.extract_strided_slice %34 {offsets = [0, 40], sizes = [8, 8], strides = [1, 1]} : vector<8x96xf32> to vector<8x8xf32>
    %53 = vector.extract_strided_slice %34 {offsets = [0, 72], sizes = [8, 8], strides = [1, 1]} : vector<8x96xf32> to vector<8x8xf32>
    %cst_24 = arith.constant dense<0.000000e+00> : vector<8x8xf32>
    %54 = tpu.matmul %51, %52, %cst_24 {dimension_numbers = #tpu.dot_dimension_numbers<[1], [1], [0], [0], [0, 0, 1, 0], [], []>} : vector<8x8xf32>, vector<8x8xf32>, vector<8x8xf32> -> vector<8x8xf32>
    %55 = arith.addf %54, %27 : vector<8x8xf32>
    %cst_25 = arith.constant dense<0xFF800000> : vector<8xf32>
    %56 = vector.multi_reduction <maximumf>, %55, %cst_25 [1] : vector<8x8xf32> to vector<8xf32>
    %57 = vector.shape_cast %56 : vector<8xf32> to vector<8x1xf32>
    %58 = vector.broadcast %57 : vector<8x1xf32> to vector<8x8xf32>
    %59 = arith.subf %55, %58 : vector<8x8xf32>
    %60 = math.exp %59 : vector<8x8xf32>
    %cst_26 = arith.constant dense<0.000000e+00> : vector<8xf32>
    %61 = vector.multi_reduction <add>, %60, %cst_26 [1] : vector<8x8xf32> to vector<8xf32>
    %62 = vector.shape_cast %61 : vector<8xf32> to vector<8x1xf32>
    %63 = tpu.reciprocal %62 {approx = true} : vector<8x1xf32> -> vector<8x1xf32>
    %64 = vector.broadcast %63 : vector<8x1xf32> to vector<8x8xf32>
    %65 = arith.mulf %60, %64 : vector<8x8xf32>
    %cst_27 = arith.constant dense<0.000000e+00> : vector<8x8xf32>
    %66 = tpu.matmul %65, %53, %cst_27 {dimension_numbers = #tpu.dot_dimension_numbers<[1], [0], [0], [1], [0, 0, 1, 1], [], []>} : vector<8x8xf32>, vector<8x8xf32>, vector<8x8xf32> -> vector<8x8xf32>
    %67 = vector.extract_strided_slice %34 {offsets = [0, 16], sizes = [8, 8], strides = [1, 1]} : vector<8x96xf32> to vector<8x8xf32>
    %68 = vector.extract_strided_slice %34 {offsets = [0, 48], sizes = [8, 8], strides = [1, 1]} : vector<8x96xf32> to vector<8x8xf32>
    %69 = vector.extract_strided_slice %34 {offsets = [0, 80], sizes = [8, 8], strides = [1, 1]} : vector<8x96xf32> to vector<8x8xf32>
    %cst_28 = arith.constant dense<0.000000e+00> : vector<8x8xf32>
    %70 = tpu.matmul %67, %68, %cst_28 {dimension_numbers = #tpu.dot_dimension_numbers<[1], [1], [0], [0], [0, 0, 1, 0], [], []>} : vector<8x8xf32>, vector<8x8xf32>, vector<8x8xf32> -> vector<8x8xf32>
    %71 = arith.addf %70, %27 : vector<8x8xf32>
    %cst_29 = arith.constant dense<0xFF800000> : vector<8xf32>
    %72 = vector.multi_reduction <maximumf>, %71, %cst_29 [1] : vector<8x8xf32> to vector<8xf32>
    %73 = vector.shape_cast %72 : vector<8xf32> to vector<8x1xf32>
    %74 = vector.broadcast %73 : vector<8x1xf32> to vector<8x8xf32>
    %75 = arith.subf %71, %74 : vector<8x8xf32>
    %76 = math.exp %75 : vector<8x8xf32>
    %cst_30 = arith.constant dense<0.000000e+00> : vector<8xf32>
    %77 = vector.multi_reduction <add>, %76, %cst_30 [1] : vector<8x8xf32> to vector<8xf32>
    %78 = vector.shape_cast %77 : vector<8xf32> to vector<8x1xf32>
    %79 = tpu.reciprocal %78 {approx = true} : vector<8x1xf32> -> vector<8x1xf32>
    %80 = vector.broadcast %79 : vector<8x1xf32> to vector<8x8xf32>
    %81 = arith.mulf %76, %80 : vector<8x8xf32>
    %cst_31 = arith.constant dense<0.000000e+00> : vector<8x8xf32>
    %82 = tpu.matmul %81, %69, %cst_31 {dimension_numbers = #tpu.dot_dimension_numbers<[1], [0], [0], [1], [0, 0, 1, 1], [], []>} : vector<8x8xf32>, vector<8x8xf32>, vector<8x8xf32> -> vector<8x8xf32>
    %83 = vector.extract_strided_slice %34 {offsets = [0, 24], sizes = [8, 8], strides = [1, 1]} : vector<8x96xf32> to vector<8x8xf32>
    %84 = vector.extract_strided_slice %34 {offsets = [0, 56], sizes = [8, 8], strides = [1, 1]} : vector<8x96xf32> to vector<8x8xf32>
    %85 = vector.extract_strided_slice %34 {offsets = [0, 88], sizes = [8, 8], strides = [1, 1]} : vector<8x96xf32> to vector<8x8xf32>
    %cst_32 = arith.constant dense<0.000000e+00> : vector<8x8xf32>
    %86 = tpu.matmul %83, %84, %cst_32 {dimension_numbers = #tpu.dot_dimension_numbers<[1], [1], [0], [0], [0, 0, 1, 0], [], []>} : vector<8x8xf32>, vector<8x8xf32>, vector<8x8xf32> -> vector<8x8xf32>
    %87 = arith.addf %86, %27 : vector<8x8xf32>
    %cst_33 = arith.constant dense<0xFF800000> : vector<8xf32>
    %88 = vector.multi_reduction <maximumf>, %87, %cst_33 [1] : vector<8x8xf32> to vector<8xf32>
    %89 = vector.shape_cast %88 : vector<8xf32> to vector<8x1xf32>
    %90 = vector.broadcast %89 : vector<8x1xf32> to vector<8x8xf32>
    %91 = arith.subf %87, %90 : vector<8x8xf32>
    %92 = math.exp %91 : vector<8x8xf32>
    %cst_34 = arith.constant dense<0.000000e+00> : vector<8xf32>
    %93 = vector.multi_reduction <add>, %92, %cst_34 [1] : vector<8x8xf32> to vector<8xf32>
    %94 = vector.shape_cast %93 : vector<8xf32> to vector<8x1xf32>
    %95 = tpu.reciprocal %94 {approx = true} : vector<8x1xf32> -> vector<8x1xf32>
    %96 = vector.broadcast %95 : vector<8x1xf32> to vector<8x8xf32>
    %97 = arith.mulf %92, %96 : vector<8x8xf32>
    %cst_35 = arith.constant dense<0.000000e+00> : vector<8x8xf32>
    %98 = tpu.matmul %97, %85, %cst_35 {dimension_numbers = #tpu.dot_dimension_numbers<[1], [0], [0], [1], [0, 0, 1, 1], [], []>} : vector<8x8xf32>, vector<8x8xf32>, vector<8x8xf32> -> vector<8x8xf32>
    %99 = tpu.concatenate %50, %66, %82, %98 in 1 : vector<8x8xf32>, vector<8x8xf32>, vector<8x8xf32>, vector<8x8xf32> -> vector<8x32xf32>
    %c0_36 = arith.constant 0 : index
    %c0_37 = arith.constant 0 : index
    %c0_38 = arith.constant 0 : index
    %100 = vector.load %arg7[%c0_36, %c0_37, %c0_38] : memref<2x32x32xf32, #tpu.memory_space<vmem>>, vector<1x32x32xf32>
    %101 = vector.shape_cast %100 : vector<1x32x32xf32> to vector<32x32xf32>
    %cst_39 = arith.constant dense<0.000000e+00> : vector<8x32xf32>
    %102 = tpu.matmul %99, %101, %cst_39 {dimension_numbers = #tpu.dot_dimension_numbers<[1], [0], [0], [1], [0, 0, 1, 1], [], []>} : vector<8x32xf32>, vector<32x32xf32>, vector<8x32xf32> -> vector<8x32xf32>
    %c0_40 = arith.constant 0 : index
    %c0_41 = arith.constant 0 : index
    %c0_42 = arith.constant 0 : index
    %103 = vector.load %arg8[%c0_40, %c0_41, %c0_42] : memref<2x1x32xf32, #tpu.memory_space<vmem>>, vector<1x1x32xf32>
    %104 = vector.shape_cast %103 : vector<1x1x32xf32> to vector<1x32xf32>
    %105 = vector.broadcast %104 : vector<1x32xf32> to vector<8x32xf32>
    %106 = arith.addf %102, %105 : vector<8x32xf32>
    %107 = arith.addf %23, %106 : vector<8x32xf32>
    %c0_43 = arith.constant 0 : index
    %c0_44 = arith.constant 0 : index
    %c0_45 = arith.constant 0 : index
    %108 = vector.load %arg9[%c0_43, %c0_44, %c0_45] : memref<2x1x32xf32, #tpu.memory_space<vmem>>, vector<1x1x32xf32>
    %109 = vector.shape_cast %108 : vector<1x1x32xf32> to vector<1x32xf32>
    %c0_46 = arith.constant 0 : index
    %c0_47 = arith.constant 0 : index
    %c0_48 = arith.constant 0 : index
    %110 = vector.load %arg10[%c0_46, %c0_47, %c0_48] : memref<2x1x32xf32, #tpu.memory_space<vmem>>, vector<1x1x32xf32>
    %111 = vector.shape_cast %110 : vector<1x1x32xf32> to vector<1x32xf32>
    %cst_49 = arith.constant dense<0.000000e+00> : vector<8xf32>
    %112 = vector.multi_reduction <add>, %107, %cst_49 [1] : vector<8x32xf32> to vector<8xf32>
    %113 = vector.shape_cast %112 : vector<8xf32> to vector<8x1xf32>
    %cst_50 = arith.constant 3.200000e+01 : f32
    %114 = vector.broadcast %cst_50 : f32 to vector<8x1xf32>
    %115 = arith.divf %113, %114 : vector<8x1xf32>
    %116 = vector.broadcast %115 : vector<8x1xf32> to vector<8x32xf32>
    %117 = arith.subf %107, %116 : vector<8x32xf32>
    %118 = arith.mulf %117, %117 : vector<8x32xf32>
    %cst_51 = arith.constant dense<0.000000e+00> : vector<8xf32>
    %119 = vector.multi_reduction <add>, %118, %cst_51 [1] : vector<8x32xf32> to vector<8xf32>
    %120 = vector.shape_cast %119 : vector<8xf32> to vector<8x1xf32>
    %cst_52 = arith.constant 3.200000e+01 : f32
    %121 = vector.broadcast %cst_52 : f32 to vector<8x1xf32>
    %122 = arith.divf %120, %121 : vector<8x1xf32>
    %cst_53 = arith.constant 9.99999974E-6 : f32
    %123 = vector.broadcast %cst_53 : f32 to vector<8x1xf32>
    %124 = arith.addf %122, %123 : vector<8x1xf32>
    %125 = math.rsqrt %124 : vector<8x1xf32>
    %126 = vector.broadcast %125 : vector<8x1xf32> to vector<8x32xf32>
    %127 = arith.mulf %117, %126 : vector<8x32xf32>
    %128 = vector.broadcast %109 : vector<1x32xf32> to vector<8x32xf32>
    %129 = arith.mulf %127, %128 : vector<8x32xf32>
    %130 = vector.broadcast %111 : vector<1x32xf32> to vector<8x32xf32>
    %131 = arith.addf %129, %130 : vector<8x32xf32>
    %c0_54 = arith.constant 0 : index
    %c0_55 = arith.constant 0 : index
    %c0_56 = arith.constant 0 : index
    %132 = vector.load %arg11[%c0_54, %c0_55, %c0_56] : memref<2x32x64xf32, #tpu.memory_space<vmem>>, vector<1x32x64xf32>
    %133 = vector.shape_cast %132 : vector<1x32x64xf32> to vector<32x64xf32>
    %cst_57 = arith.constant dense<0.000000e+00> : vector<8x64xf32>
    %134 = tpu.matmul %131, %133, %cst_57 {dimension_numbers = #tpu.dot_dimension_numbers<[1], [0], [0], [1], [0, 0, 1, 1], [], []>} : vector<8x32xf32>, vector<32x64xf32>, vector<8x64xf32> -> vector<8x64xf32>
    %c0_58 = arith.constant 0 : index
    %c0_59 = arith.constant 0 : index
    %c0_60 = arith.constant 0 : index
    %135 = vector.load %arg12[%c0_58, %c0_59, %c0_60] : memref<2x1x64xf32, #tpu.memory_space<vmem>>, vector<1x1x64xf32>
    %136 = vector.shape_cast %135 : vector<1x1x64xf32> to vector<1x64xf32>
    %137 = vector.broadcast %136 : vector<1x64xf32> to vector<8x64xf32>
    %138 = arith.addf %134, %137 : vector<8x64xf32>
    %cst_61 = arith.constant 0.000000e+00 : f32
    %139 = vector.broadcast %cst_61 : f32 to vector<8x64xf32>
    %140 = arith.maximumf %138, %139 : vector<8x64xf32>
    %c0_62 = arith.constant 0 : index
    %c0_63 = arith.constant 0 : index
    %c0_64 = arith.constant 0 : index
    %141 = vector.load %arg13[%c0_62, %c0_63, %c0_64] : memref<2x64x32xf32, #tpu.memory_space<vmem>>, vector<1x64x32xf32>
    %142 = vector.shape_cast %141 : vector<1x64x32xf32> to vector<64x32xf32>
    %cst_65 = arith.constant dense<0.000000e+00> : vector<8x32xf32>
    %143 = tpu.matmul %140, %142, %cst_65 {dimension_numbers = #tpu.dot_dimension_numbers<[1], [0], [0], [1], [0, 0, 1, 1], [], []>} : vector<8x64xf32>, vector<64x32xf32>, vector<8x32xf32> -> vector<8x32xf32>
    %c0_66 = arith.constant 0 : index
    %c0_67 = arith.constant 0 : index
    %c0_68 = arith.constant 0 : index
    %144 = vector.load %arg14[%c0_66, %c0_67, %c0_68] : memref<2x1x32xf32, #tpu.memory_space<vmem>>, vector<1x1x32xf32>
    %145 = vector.shape_cast %144 : vector<1x1x32xf32> to vector<1x32xf32>
    %146 = vector.broadcast %145 : vector<1x32xf32> to vector<8x32xf32>
    %147 = arith.addf %143, %146 : vector<8x32xf32>
    %148 = arith.addf %131, %147 : vector<8x32xf32>
    %c0_69 = arith.constant 0 : index
    %c0_70 = arith.constant 0 : index
    %c0_71 = arith.constant 0 : index
    %149 = vector.load %arg15[%c0_69, %c0_70, %c0_71] : memref<2x1x32xf32, #tpu.memory_space<vmem>>, vector<1x1x32xf32>
    %150 = vector.shape_cast %149 : vector<1x1x32xf32> to vector<1x32xf32>
    %c0_72 = arith.constant 0 : index
    %c0_73 = arith.constant 0 : index
    %c0_74 = arith.constant 0 : index
    %151 = vector.load %arg16[%c0_72, %c0_73, %c0_74] : memref<2x1x32xf32, #tpu.memory_space<vmem>>, vector<1x1x32xf32>
    %152 = vector.shape_cast %151 : vector<1x1x32xf32> to vector<1x32xf32>
    %cst_75 = arith.constant dense<0.000000e+00> : vector<8xf32>
    %153 = vector.multi_reduction <add>, %148, %cst_75 [1] : vector<8x32xf32> to vector<8xf32>
    %154 = vector.shape_cast %153 : vector<8xf32> to vector<8x1xf32>
    %cst_76 = arith.constant 3.200000e+01 : f32
    %155 = vector.broadcast %cst_76 : f32 to vector<8x1xf32>
    %156 = arith.divf %154, %155 : vector<8x1xf32>
    %157 = vector.broadcast %156 : vector<8x1xf32> to vector<8x32xf32>
    %158 = arith.subf %148, %157 : vector<8x32xf32>
    %159 = arith.mulf %158, %158 : vector<8x32xf32>
    %cst_77 = arith.constant dense<0.000000e+00> : vector<8xf32>
    %160 = vector.multi_reduction <add>, %159, %cst_77 [1] : vector<8x32xf32> to vector<8xf32>
    %161 = vector.shape_cast %160 : vector<8xf32> to vector<8x1xf32>
    %cst_78 = arith.constant 3.200000e+01 : f32
    %162 = vector.broadcast %cst_78 : f32 to vector<8x1xf32>
    %163 = arith.divf %161, %162 : vector<8x1xf32>
    %cst_79 = arith.constant 9.99999974E-6 : f32
    %164 = vector.broadcast %cst_79 : f32 to vector<8x1xf32>
    %165 = arith.addf %163, %164 : vector<8x1xf32>
    %166 = math.rsqrt %165 : vector<8x1xf32>
    %167 = vector.broadcast %166 : vector<8x1xf32> to vector<8x32xf32>
    %168 = arith.mulf %158, %167 : vector<8x32xf32>
    %169 = vector.broadcast %150 : vector<1x32xf32> to vector<8x32xf32>
    %170 = arith.mulf %168, %169 : vector<8x32xf32>
    %171 = vector.broadcast %152 : vector<1x32xf32> to vector<8x32xf32>
    %172 = arith.addf %170, %171 : vector<8x32xf32>
    %c1 = arith.constant 1 : index
    %c0_80 = arith.constant 0 : index
    %c0_81 = arith.constant 0 : index
    %173 = vector.load %arg5[%c1, %c0_80, %c0_81] : memref<2x32x96xf32, #tpu.memory_space<vmem>>, vector<1x32x96xf32>
    %174 = vector.shape_cast %173 : vector<1x32x96xf32> to vector<32x96xf32>
    %cst_82 = arith.constant dense<0.000000e+00> : vector<8x96xf32>
    %175 = tpu.matmul %172, %174, %cst_82 {dimension_numbers = #tpu.dot_dimension_numbers<[1], [0], [0], [1], [0, 0, 1, 1], [], []>} : vector<8x32xf32>, vector<32x96xf32>, vector<8x96xf32> -> vector<8x96xf32>
    %c1_83 = arith.constant 1 : index
    %c0_84 = arith.constant 0 : index
    %c0_85 = arith.constant 0 : index
    %176 = vector.load %arg6[%c1_83, %c0_84, %c0_85] : memref<2x1x96xf32, #tpu.memory_space<vmem>>, vector<1x1x96xf32>
    %177 = vector.shape_cast %176 : vector<1x1x96xf32> to vector<1x96xf32>
    %178 = vector.broadcast %177 : vector<1x96xf32> to vector<8x96xf32>
    %179 = arith.addf %175, %178 : vector<8x96xf32>
    %180 = vector.extract_strided_slice %179 {offsets = [0, 0], sizes = [8, 8], strides = [1, 1]} : vector<8x96xf32> to vector<8x8xf32>
    %181 = vector.extract_strided_slice %179 {offsets = [0, 32], sizes = [8, 8], strides = [1, 1]} : vector<8x96xf32> to vector<8x8xf32>
    %182 = vector.extract_strided_slice %179 {offsets = [0, 64], sizes = [8, 8], strides = [1, 1]} : vector<8x96xf32> to vector<8x8xf32>
    %cst_86 = arith.constant dense<0.000000e+00> : vector<8x8xf32>
    %183 = tpu.matmul %180, %181, %cst_86 {dimension_numbers = #tpu.dot_dimension_numbers<[1], [1], [0], [0], [0, 0, 1, 0], [], []>} : vector<8x8xf32>, vector<8x8xf32>, vector<8x8xf32> -> vector<8x8xf32>
    %184 = arith.addf %183, %27 : vector<8x8xf32>
    %cst_87 = arith.constant dense<0xFF800000> : vector<8xf32>
    %185 = vector.multi_reduction <maximumf>, %184, %cst_87 [1] : vector<8x8xf32> to vector<8xf32>
    %186 = vector.shape_cast %185 : vector<8xf32> to vector<8x1xf32>
    %187 = vector.broadcast %186 : vector<8x1xf32> to vector<8x8xf32>
    %188 = arith.subf %184, %187 : vector<8x8xf32>
    %189 = math.exp %188 : vector<8x8xf32>
    %cst_88 = arith.constant dense<0.000000e+00> : vector<8xf32>
    %190 = vector.multi_reduction <add>, %189, %cst_88 [1] : vector<8x8xf32> to vector<8xf32>
    %191 = vector.shape_cast %190 : vector<8xf32> to vector<8x1xf32>
    %192 = tpu.reciprocal %191 {approx = true} : vector<8x1xf32> -> vector<8x1xf32>
    %193 = vector.broadcast %192 : vector<8x1xf32> to vector<8x8xf32>
    %194 = arith.mulf %189, %193 : vector<8x8xf32>
    %cst_89 = arith.constant dense<0.000000e+00> : vector<8x8xf32>
    %195 = tpu.matmul %194, %182, %cst_89 {dimension_numbers = #tpu.dot_dimension_numbers<[1], [0], [0], [1], [0, 0, 1, 1], [], []>} : vector<8x8xf32>, vector<8x8xf32>, vector<8x8xf32> -> vector<8x8xf32>
    %196 = vector.extract_strided_slice %179 {offsets = [0, 8], sizes = [8, 8], strides = [1, 1]} : vector<8x96xf32> to vector<8x8xf32>
    %197 = vector.extract_strided_slice %179 {offsets = [0, 40], sizes = [8, 8], strides = [1, 1]} : vector<8x96xf32> to vector<8x8xf32>
    %198 = vector.extract_strided_slice %179 {offsets = [0, 72], sizes = [8, 8], strides = [1, 1]} : vector<8x96xf32> to vector<8x8xf32>
    %cst_90 = arith.constant dense<0.000000e+00> : vector<8x8xf32>
    %199 = tpu.matmul %196, %197, %cst_90 {dimension_numbers = #tpu.dot_dimension_numbers<[1], [1], [0], [0], [0, 0, 1, 0], [], []>} : vector<8x8xf32>, vector<8x8xf32>, vector<8x8xf32> -> vector<8x8xf32>
    %200 = arith.addf %199, %27 : vector<8x8xf32>
    %cst_91 = arith.constant dense<0xFF800000> : vector<8xf32>
    %201 = vector.multi_reduction <maximumf>, %200, %cst_91 [1] : vector<8x8xf32> to vector<8xf32>
    %202 = vector.shape_cast %201 : vector<8xf32> to vector<8x1xf32>
    %203 = vector.broadcast %202 : vector<8x1xf32> to vector<8x8xf32>
    %204 = arith.subf %200, %203 : vector<8x8xf32>
    %205 = math.exp %204 : vector<8x8xf32>
    %cst_92 = arith.constant dense<0.000000e+00> : vector<8xf32>
    %206 = vector.multi_reduction <add>, %205, %cst_92 [1] : vector<8x8xf32> to vector<8xf32>
    %207 = vector.shape_cast %206 : vector<8xf32> to vector<8x1xf32>
    %208 = tpu.reciprocal %207 {approx = true} : vector<8x1xf32> -> vector<8x1xf32>
    %209 = vector.broadcast %208 : vector<8x1xf32> to vector<8x8xf32>
    %210 = arith.mulf %205, %209 : vector<8x8xf32>
    %cst_93 = arith.constant dense<0.000000e+00> : vector<8x8xf32>
    %211 = tpu.matmul %210, %198, %cst_93 {dimension_numbers = #tpu.dot_dimension_numbers<[1], [0], [0], [1], [0, 0, 1, 1], [], []>} : vector<8x8xf32>, vector<8x8xf32>, vector<8x8xf32> -> vector<8x8xf32>
    %212 = vector.extract_strided_slice %179 {offsets = [0, 16], sizes = [8, 8], strides = [1, 1]} : vector<8x96xf32> to vector<8x8xf32>
    %213 = vector.extract_strided_slice %179 {offsets = [0, 48], sizes = [8, 8], strides = [1, 1]} : vector<8x96xf32> to vector<8x8xf32>
    %214 = vector.extract_strided_slice %179 {offsets = [0, 80], sizes = [8, 8], strides = [1, 1]} : vector<8x96xf32> to vector<8x8xf32>
    %cst_94 = arith.constant dense<0.000000e+00> : vector<8x8xf32>
    %215 = tpu.matmul %212, %213, %cst_94 {dimension_numbers = #tpu.dot_dimension_numbers<[1], [1], [0], [0], [0, 0, 1, 0], [], []>} : vector<8x8xf32>, vector<8x8xf32>, vector<8x8xf32> -> vector<8x8xf32>
    %216 = arith.addf %215, %27 : vector<8x8xf32>
    %cst_95 = arith.constant dense<0xFF800000> : vector<8xf32>
    %217 = vector.multi_reduction <maximumf>, %216, %cst_95 [1] : vector<8x8xf32> to vector<8xf32>
    %218 = vector.shape_cast %217 : vector<8xf32> to vector<8x1xf32>
    %219 = vector.broadcast %218 : vector<8x1xf32> to vector<8x8xf32>
    %220 = arith.subf %216, %219 : vector<8x8xf32>
    %221 = math.exp %220 : vector<8x8xf32>
    %cst_96 = arith.constant dense<0.000000e+00> : vector<8xf32>
    %222 = vector.multi_reduction <add>, %221, %cst_96 [1] : vector<8x8xf32> to vector<8xf32>
    %223 = vector.shape_cast %222 : vector<8xf32> to vector<8x1xf32>
    %224 = tpu.reciprocal %223 {approx = true} : vector<8x1xf32> -> vector<8x1xf32>
    %225 = vector.broadcast %224 : vector<8x1xf32> to vector<8x8xf32>
    %226 = arith.mulf %221, %225 : vector<8x8xf32>
    %cst_97 = arith.constant dense<0.000000e+00> : vector<8x8xf32>
    %227 = tpu.matmul %226, %214, %cst_97 {dimension_numbers = #tpu.dot_dimension_numbers<[1], [0], [0], [1], [0, 0, 1, 1], [], []>} : vector<8x8xf32>, vector<8x8xf32>, vector<8x8xf32> -> vector<8x8xf32>
    %228 = vector.extract_strided_slice %179 {offsets = [0, 24], sizes = [8, 8], strides = [1, 1]} : vector<8x96xf32> to vector<8x8xf32>
    %229 = vector.extract_strided_slice %179 {offsets = [0, 56], sizes = [8, 8], strides = [1, 1]} : vector<8x96xf32> to vector<8x8xf32>
    %230 = vector.extract_strided_slice %179 {offsets = [0, 88], sizes = [8, 8], strides = [1, 1]} : vector<8x96xf32> to vector<8x8xf32>
    %cst_98 = arith.constant dense<0.000000e+00> : vector<8x8xf32>
    %231 = tpu.matmul %228, %229, %cst_98 {dimension_numbers = #tpu.dot_dimension_numbers<[1], [1], [0], [0], [0, 0, 1, 0], [], []>} : vector<8x8xf32>, vector<8x8xf32>, vector<8x8xf32> -> vector<8x8xf32>
    %232 = arith.addf %231, %27 : vector<8x8xf32>
    %cst_99 = arith.constant dense<0xFF800000> : vector<8xf32>
    %233 = vector.multi_reduction <maximumf>, %232, %cst_99 [1] : vector<8x8xf32> to vector<8xf32>
    %234 = vector.shape_cast %233 : vector<8xf32> to vector<8x1xf32>
    %235 = vector.broadcast %234 : vector<8x1xf32> to vector<8x8xf32>
    %236 = arith.subf %232, %235 : vector<8x8xf32>
    %237 = math.exp %236 : vector<8x8xf32>
    %cst_100 = arith.constant dense<0.000000e+00> : vector<8xf32>
    %238 = vector.multi_reduction <add>, %237, %cst_100 [1] : vector<8x8xf32> to vector<8xf32>
    %239 = vector.shape_cast %238 : vector<8xf32> to vector<8x1xf32>
    %240 = tpu.reciprocal %239 {approx = true} : vector<8x1xf32> -> vector<8x1xf32>
    %241 = vector.broadcast %240 : vector<8x1xf32> to vector<8x8xf32>
    %242 = arith.mulf %237, %241 : vector<8x8xf32>
    %cst_101 = arith.constant dense<0.000000e+00> : vector<8x8xf32>
    %243 = tpu.matmul %242, %230, %cst_101 {dimension_numbers = #tpu.dot_dimension_numbers<[1], [0], [0], [1], [0, 0, 1, 1], [], []>} : vector<8x8xf32>, vector<8x8xf32>, vector<8x8xf32> -> vector<8x8xf32>
    %244 = tpu.concatenate %195, %211, %227, %243 in 1 : vector<8x8xf32>, vector<8x8xf32>, vector<8x8xf32>, vector<8x8xf32> -> vector<8x32xf32>
    %c1_102 = arith.constant 1 : index
    %c0_103 = arith.constant 0 : index
    %c0_104 = arith.constant 0 : index
    %245 = vector.load %arg7[%c1_102, %c0_103, %c0_104] : memref<2x32x32xf32, #tpu.memory_space<vmem>>, vector<1x32x32xf32>
    %246 = vector.shape_cast %245 : vector<1x32x32xf32> to vector<32x32xf32>
    %cst_105 = arith.constant dense<0.000000e+00> : vector<8x32xf32>
    %247 = tpu.matmul %244, %246, %cst_105 {dimension_numbers = #tpu.dot_dimension_numbers<[1], [0], [0], [1], [0, 0, 1, 1], [], []>} : vector<8x32xf32>, vector<32x32xf32>, vector<8x32xf32> -> vector<8x32xf32>
    %c1_106 = arith.constant 1 : index
    %c0_107 = arith.constant 0 : index
    %c0_108 = arith.constant 0 : index
    %248 = vector.load %arg8[%c1_106, %c0_107, %c0_108] : memref<2x1x32xf32, #tpu.memory_space<vmem>>, vector<1x1x32xf32>
    %249 = vector.shape_cast %248 : vector<1x1x32xf32> to vector<1x32xf32>
    %250 = vector.broadcast %249 : vector<1x32xf32> to vector<8x32xf32>
    %251 = arith.addf %247, %250 : vector<8x32xf32>
    %252 = arith.addf %172, %251 : vector<8x32xf32>
    %c1_109 = arith.constant 1 : index
    %c0_110 = arith.constant 0 : index
    %c0_111 = arith.constant 0 : index
    %253 = vector.load %arg9[%c1_109, %c0_110, %c0_111] : memref<2x1x32xf32, #tpu.memory_space<vmem>>, vector<1x1x32xf32>
    %254 = vector.shape_cast %253 : vector<1x1x32xf32> to vector<1x32xf32>
    %c1_112 = arith.constant 1 : index
    %c0_113 = arith.constant 0 : index
    %c0_114 = arith.constant 0 : index
    %255 = vector.load %arg10[%c1_112, %c0_113, %c0_114] : memref<2x1x32xf32, #tpu.memory_space<vmem>>, vector<1x1x32xf32>
    %256 = vector.shape_cast %255 : vector<1x1x32xf32> to vector<1x32xf32>
    %cst_115 = arith.constant dense<0.000000e+00> : vector<8xf32>
    %257 = vector.multi_reduction <add>, %252, %cst_115 [1] : vector<8x32xf32> to vector<8xf32>
    %258 = vector.shape_cast %257 : vector<8xf32> to vector<8x1xf32>
    %cst_116 = arith.constant 3.200000e+01 : f32
    %259 = vector.broadcast %cst_116 : f32 to vector<8x1xf32>
    %260 = arith.divf %258, %259 : vector<8x1xf32>
    %261 = vector.broadcast %260 : vector<8x1xf32> to vector<8x32xf32>
    %262 = arith.subf %252, %261 : vector<8x32xf32>
    %263 = arith.mulf %262, %262 : vector<8x32xf32>
    %cst_117 = arith.constant dense<0.000000e+00> : vector<8xf32>
    %264 = vector.multi_reduction <add>, %263, %cst_117 [1] : vector<8x32xf32> to vector<8xf32>
    %265 = vector.shape_cast %264 : vector<8xf32> to vector<8x1xf32>
    %cst_118 = arith.constant 3.200000e+01 : f32
    %266 = vector.broadcast %cst_118 : f32 to vector<8x1xf32>
    %267 = arith.divf %265, %266 : vector<8x1xf32>
    %cst_119 = arith.constant 9.99999974E-6 : f32
    %268 = vector.broadcast %cst_119 : f32 to vector<8x1xf32>
    %269 = arith.addf %267, %268 : vector<8x1xf32>
    %270 = math.rsqrt %269 : vector<8x1xf32>
    %271 = vector.broadcast %270 : vector<8x1xf32> to vector<8x32xf32>
    %272 = arith.mulf %262, %271 : vector<8x32xf32>
    %273 = vector.broadcast %254 : vector<1x32xf32> to vector<8x32xf32>
    %274 = arith.mulf %272, %273 : vector<8x32xf32>
    %275 = vector.broadcast %256 : vector<1x32xf32> to vector<8x32xf32>
    %276 = arith.addf %274, %275 : vector<8x32xf32>
    %c1_120 = arith.constant 1 : index
    %c0_121 = arith.constant 0 : index
    %c0_122 = arith.constant 0 : index
    %277 = vector.load %arg11[%c1_120, %c0_121, %c0_122] : memref<2x32x64xf32, #tpu.memory_space<vmem>>, vector<1x32x64xf32>
    %278 = vector.shape_cast %277 : vector<1x32x64xf32> to vector<32x64xf32>
    %cst_123 = arith.constant dense<0.000000e+00> : vector<8x64xf32>
    %279 = tpu.matmul %276, %278, %cst_123 {dimension_numbers = #tpu.dot_dimension_numbers<[1], [0], [0], [1], [0, 0, 1, 1], [], []>} : vector<8x32xf32>, vector<32x64xf32>, vector<8x64xf32> -> vector<8x64xf32>
    %c1_124 = arith.constant 1 : index
    %c0_125 = arith.constant 0 : index
    %c0_126 = arith.constant 0 : index
    %280 = vector.load %arg12[%c1_124, %c0_125, %c0_126] : memref<2x1x64xf32, #tpu.memory_space<vmem>>, vector<1x1x64xf32>
    %281 = vector.shape_cast %280 : vector<1x1x64xf32> to vector<1x64xf32>
    %282 = vector.broadcast %281 : vector<1x64xf32> to vector<8x64xf32>
    %283 = arith.addf %279, %282 : vector<8x64xf32>
    %cst_127 = arith.constant 0.000000e+00 : f32
    %284 = vector.broadcast %cst_127 : f32 to vector<8x64xf32>
    %285 = arith.maximumf %283, %284 : vector<8x64xf32>
    %c1_128 = arith.constant 1 : index
    %c0_129 = arith.constant 0 : index
    %c0_130 = arith.constant 0 : index
    %286 = vector.load %arg13[%c1_128, %c0_129, %c0_130] : memref<2x64x32xf32, #tpu.memory_space<vmem>>, vector<1x64x32xf32>
    %287 = vector.shape_cast %286 : vector<1x64x32xf32> to vector<64x32xf32>
    %cst_131 = arith.constant dense<0.000000e+00> : vector<8x32xf32>
    %288 = tpu.matmul %285, %287, %cst_131 {dimension_numbers = #tpu.dot_dimension_numbers<[1], [0], [0], [1], [0, 0, 1, 1], [], []>} : vector<8x64xf32>, vector<64x32xf32>, vector<8x32xf32> -> vector<8x32xf32>
    %c1_132 = arith.constant 1 : index
    %c0_133 = arith.constant 0 : index
    %c0_134 = arith.constant 0 : index
    %289 = vector.load %arg14[%c1_132, %c0_133, %c0_134] : memref<2x1x32xf32, #tpu.memory_space<vmem>>, vector<1x1x32xf32>
    %290 = vector.shape_cast %289 : vector<1x1x32xf32> to vector<1x32xf32>
    %291 = vector.broadcast %290 : vector<1x32xf32> to vector<8x32xf32>
    %292 = arith.addf %288, %291 : vector<8x32xf32>
    %293 = arith.addf %276, %292 : vector<8x32xf32>
    %c1_135 = arith.constant 1 : index
    %c0_136 = arith.constant 0 : index
    %c0_137 = arith.constant 0 : index
    %294 = vector.load %arg15[%c1_135, %c0_136, %c0_137] : memref<2x1x32xf32, #tpu.memory_space<vmem>>, vector<1x1x32xf32>
    %295 = vector.shape_cast %294 : vector<1x1x32xf32> to vector<1x32xf32>
    %c1_138 = arith.constant 1 : index
    %c0_139 = arith.constant 0 : index
    %c0_140 = arith.constant 0 : index
    %296 = vector.load %arg16[%c1_138, %c0_139, %c0_140] : memref<2x1x32xf32, #tpu.memory_space<vmem>>, vector<1x1x32xf32>
    %297 = vector.shape_cast %296 : vector<1x1x32xf32> to vector<1x32xf32>
    %cst_141 = arith.constant dense<0.000000e+00> : vector<8xf32>
    %298 = vector.multi_reduction <add>, %293, %cst_141 [1] : vector<8x32xf32> to vector<8xf32>
    %299 = vector.shape_cast %298 : vector<8xf32> to vector<8x1xf32>
    %cst_142 = arith.constant 3.200000e+01 : f32
    %300 = vector.broadcast %cst_142 : f32 to vector<8x1xf32>
    %301 = arith.divf %299, %300 : vector<8x1xf32>
    %302 = vector.broadcast %301 : vector<8x1xf32> to vector<8x32xf32>
    %303 = arith.subf %293, %302 : vector<8x32xf32>
    %304 = arith.mulf %303, %303 : vector<8x32xf32>
    %cst_143 = arith.constant dense<0.000000e+00> : vector<8xf32>
    %305 = vector.multi_reduction <add>, %304, %cst_143 [1] : vector<8x32xf32> to vector<8xf32>
    %306 = vector.shape_cast %305 : vector<8xf32> to vector<8x1xf32>
    %cst_144 = arith.constant 3.200000e+01 : f32
    %307 = vector.broadcast %cst_144 : f32 to vector<8x1xf32>
    %308 = arith.divf %306, %307 : vector<8x1xf32>
    %cst_145 = arith.constant 9.99999974E-6 : f32
    %309 = vector.broadcast %cst_145 : f32 to vector<8x1xf32>
    %310 = arith.addf %308, %309 : vector<8x1xf32>
    %311 = math.rsqrt %310 : vector<8x1xf32>
    %312 = vector.broadcast %311 : vector<8x1xf32> to vector<8x32xf32>
    %313 = arith.mulf %303, %312 : vector<8x32xf32>
    %314 = vector.broadcast %295 : vector<1x32xf32> to vector<8x32xf32>
    %315 = arith.mulf %313, %314 : vector<8x32xf32>
    %316 = vector.broadcast %297 : vector<1x32xf32> to vector<8x32xf32>
    %317 = arith.addf %315, %316 : vector<8x32xf32>
    %c0_146 = arith.constant 0 : index
    %c0_147 = arith.constant 0 : index
    %c0_148 = arith.constant 0 : index
    %318 = vector.load %arg17[%c0_146, %c0_147, %c0_148] : memref<1x8x32xf32, #tpu.memory_space<vmem>>, vector<1x8x32xf32>
    %319 = vector.shape_cast %318 : vector<1x8x32xf32> to vector<8x32xf32>
    %320 = vector.shape_cast %317 : vector<8x32xf32> to vector<1x8x32xf32>
    tpu.vector_store %arg17[%c0_146, %c0_147, %c0_148], %320 {strides = array<i32>} : memref<1x8x32xf32, #tpu.memory_space<vmem>>, vector<1x8x32xf32>,
    return
  }
  func.func @transform_0(%arg0: i32) -> (i32, i32, i32) {
    %c0_i32 = arith.constant 0 : i32
    %c0_i32_0 = arith.constant 0 : i32
    %c0_i32_1 = arith.constant 0 : i32
    return %arg0, %c0_i32, %c0_i32_0 : i32, i32, i32
  }
  func.func @transform_1(%arg0: i32) -> (i32, i32, i32) {
    %c0_i32 = arith.constant 0 : i32
    %c0_i32_0 = arith.constant 0 : i32
    %c0_i32_1 = arith.constant 0 : i32
    return %arg0, %c0_i32, %c0_i32_0 : i32, i32, i32
  }
  func.func @transform_2(%arg0: i32) -> (i32, i32) {
    %c0_i32 = arith.constant 0 : i32
    %c0_i32_0 = arith.constant 0 : i32
    %c0_i32_1 = arith.constant 0 : i32
    return %c0_i32, %c0_i32_0 : i32, i32
  }
  func.func @transform_3(%arg0: i32) -> (i32, i32) {
    %c0_i32 = arith.constant 0 : i32
    %c0_i32_0 = arith.constant 0 : i32
    %c0_i32_1 = arith.constant 0 : i32
    return %c0_i32, %c0_i32_0 : i32, i32
  }
  func.func @transform_4(%arg0: i32) -> (i32, i32, i32) {
    %c0_i32 = arith.constant 0 : i32
    %c0_i32_0 = arith.constant 0 : i32
    %c0_i32_1 = arith.constant 0 : i32
    %c0_i32_2 = arith.constant 0 : i32
    return %c0_i32, %c0_i32_0, %c0_i32_1 : i32, i32, i32
  }
  func.func @transform_5(%arg0: i32) -> (i32, i32, i32) {
    %c0_i32 = arith.constant 0 : i32
    %c0_i32_0 = arith.constant 0 : i32
    %c0_i32_1 = arith.constant 0 : i32
    %c0_i32_2 = arith.constant 0 : i32
    return %c0_i32, %c0_i32_0, %c0_i32_1 : i32, i32, i32
  }
  func.func @transform_6(%arg0: i32) -> (i32, i32, i32) {
    %c0_i32 = arith.constant 0 : i32
    %c0_i32_0 = arith.constant 0 : i32
    %c0_i32_1 = arith.constant 0 : i32
    %c0_i32_2 = arith.constant 0 : i32
    return %c0_i32, %c0_i32_0, %c0_i32_1 : i32, i32, i32
  }
  func.func @transform_7(%arg0: i32) -> (i32, i32, i32) {
    %c0_i32 = arith.constant 0 : i32
    %c0_i32_0 = arith.constant 0 : i32
    %c0_i32_1 = arith.constant 0 : i32
    %c0_i32_2 = arith.constant 0 : i32
    return %c0_i32, %c0_i32_0, %c0_i32_1 : i32, i32, i32
  }
  func.func @transform_8(%arg0: i32) -> (i32, i32, i32) {
    %c0_i32 = arith.constant 0 : i32
    %c0_i32_0 = arith.constant 0 : i32
    %c0_i32_1 = arith.constant 0 : i32
    %c0_i32_2 = arith.constant 0 : i32
    return %c0_i32, %c0_i32_0, %c0_i32_1 : i32, i32, i32
  }
  func.func @transform_9(%arg0: i32) -> (i32, i32, i32) {
    %c0_i32 = arith.constant 0 : i32
    %c0_i32_0 = arith.constant 0 : i32
    %c0_i32_1 = arith.constant 0 : i32
    %c0_i32_2 = arith.constant 0 : i32
    return %c0_i32, %c0_i32_0, %c0_i32_1 : i32, i32, i32
  }
  func.func @transform_10(%arg0: i32) -> (i32, i32, i32) {
    %c0_i32 = arith.constant 0 : i32
    %c0_i32_0 = arith.constant 0 : i32
    %c0_i32_1 = arith.constant 0 : i32
    %c0_i32_2 = arith.constant 0 : i32
    return %c0_i32, %c0_i32_0, %c0_i32_1 : i32, i32, i32
  }
  func.func @transform_11(%arg0: i32) -> (i32, i32, i32) {
    %c0_i32 = arith.constant 0 : i32
    %c0_i32_0 = arith.constant 0 : i32
    %c0_i32_1 = arith.constant 0 : i32
    %c0_i32_2 = arith.constant 0 : i32
    return %c0_i32, %c0_i32_0, %c0_i32_1 : i32, i32, i32
  }
  func.func @transform_12(%arg0: i32) -> (i32, i32, i32) {
    %c0_i32 = arith.constant 0 : i32
    %c0_i32_0 = arith.constant 0 : i32
    %c0_i32_1 = arith.constant 0 : i32
    %c0_i32_2 = arith.constant 0 : i32
    return %c0_i32, %c0_i32_0, %c0_i32_1 : i32, i32, i32
  }
  func.func @transform_13(%arg0: i32) -> (i32, i32, i32) {
    %c0_i32 = arith.constant 0 : i32
    %c0_i32_0 = arith.constant 0 : i32
    %c0_i32_1 = arith.constant 0 : i32
    %c0_i32_2 = arith.constant 0 : i32
    return %c0_i32, %c0_i32_0, %c0_i32_1 : i32, i32, i32
  }
  func.func @transform_14(%arg0: i32) -> (i32, i32, i32) {
    %c0_i32 = arith.constant 0 : i32
    %c0_i32_0 = arith.constant 0 : i32
    %c0_i32_1 = arith.constant 0 : i32
    %c0_i32_2 = arith.constant 0 : i32
    return %c0_i32, %c0_i32_0, %c0_i32_1 : i32, i32, i32
  }
  func.func @transform_15(%arg0: i32) -> (i32, i32, i32) {
    %c0_i32 = arith.constant 0 : i32
    %c0_i32_0 = arith.constant 0 : i32
    %c0_i32_1 = arith.constant 0 : i32
    %c0_i32_2 = arith.constant 0 : i32
    return %c0_i32, %c0_i32_0, %c0_i32_1 : i32, i32, i32
  }
  func.func @transform_16(%arg0: i32) -> (i32, i32, i32) {
    %c0_i32 = arith.constant 0 : i32
    %c0_i32_0 = arith.constant 0 : i32
    %c0_i32_1 = arith.constant 0 : i32
    return %arg0, %c0_i32, %c0_i32_0 : i32, i32, i32
  }
}

</mosaic_0001>

<bundles_post_ra>
// kernel: transformer_encoder_forward.1
= control target key start
LH: loop header
LB: loop body
LE: loop exit
PB: predicated region body
PF: predicated region fallthrough
CT: control target
= control target key end

     0   :  { %s2394_s0 = inlined_call_operand.vmem [shape: f32[2,8,32], index: 0, kind: input, shape index: {}]   ;;  %s2395_s1 = inlined_call_operand.vmem [shape: f32[2,1,8], index: 1, kind: input, shape index: {}]   ;;  %s2396_s2 = inlined_call_operand.vmem [shape: f32[1,32], index: 2, kind: input, shape index: {}]   ;;  %s2397_s3 = inlined_call_operand.vmem [shape: f32[1,32], index: 3, kind: input, shape index: {}]   ;;  %s2398_s4 = inlined_call_operand.vmem [shape: f32[2,32,96], index: 4, kind: input, shape index: {}]   ;;  %s2399_s5 = inlined_call_operand.vmem [shape: f32[2,1,96], index: 5, kind: input, shape index: {}]   ;;  %s2400_s6 = inlined_call_operand.vmem [shape: f32[2,32,32], index: 6, kind: input, shape index: {}]   ;;  %s2401_s7 = inlined_call_operand.vmem [shape: f32[2,1,32], index: 7, kind: input, shape index: {}]   ;;  %s2402_s8 = inlined_call_operand.vmem [shape: f32[2,1,32], index: 8, kind: input, shape index: {}]   ;;  %s2403_s9 = inlined_call_operand.vmem [shape: f32[2,1,32], index: 9, kind: input, shape index: {}]   ;;  %s2404_s10 = inlined_call_operand.vmem [shape: f32[2,32,64], index: 10, kind: input, shape index: {}]   ;;  %s2405_s11 = inlined_call_operand.vmem [shape: f32[2,1,64], index: 11, kind: input, shape index: {}]   ;;  %s2406_s12 = inlined_call_operand.vmem [shape: f32[2,64,32], index: 12, kind: input, shape index: {}]   ;;  %s2407_s13 = inlined_call_operand.vmem [shape: f32[2,1,32], index: 13, kind: input, shape index: {}]   ;;  %s2408_s14 = inlined_call_operand.vmem [shape: f32[2,1,32], index: 14, kind: input, shape index: {}]   ;;  %s2409_s15 = inlined_call_operand.vmem [shape: f32[2,1,32], index: 15, kind: input, shape index: {}]   ;;  %s2410_s16 = inlined_call_operand.hbm [shape: f32[2,8,32], index: 16, kind: output, shape index: {}]  }
   0x1   :  { %2428 = sst [smem:[#allocation8_spill]] %s2394_s0 }
   0x2   :  { %2429 = sst [smem:[#allocation9_spill]] %s2395_s1 }
   0x3   :  { %2430 = sst [smem:[#allocation10_spill]] %s2396_s2 }
   0x4   :  { %2431 = sst [smem:[#allocation11_spill]] %s2397_s3 }
   0x5   :  { %21 = vsyncpa [#allocation3], 0 }
   0x6   :  { %23 = vsyncpa [#allocation3 + $0x1], 0  ;;  %s1966_s21 = smov 0   ;;  %s1968_s22 = smov 0  }
   0x7   :  { %s1970_s23 = smov 0   ;;  %s1972_s24 = smov 0  }
   0x8 LB: > { %2432 = sst [smem:[#allocation5_spill]] %s1860_s23  ;;  %s1987_s25 = sadd.s32 4294967295, %s1864_s24   ;;  %s1864_s24 = sphi %s1972_s24, %s2456_s24   ;;  %s1860_s23 = sphi %s1970_s23, %s2458_s23   ;;  %s1856_s22 = sphi %s1968_s22, %s2460_s22   ;;  %s1852_s21 = sphi %s1966_s21, %s2459_s21  }
   0x9   : > { %s1615_s26 = sadd.s32 4294967294, %s1864_s24   ;;  %s1991_s27 = sadd.s32 1, %s1864_s24  }
   0xa   : > { %2433 = sst [smem:[#allocation6_spill]] %s1991_s27  ;;  %s382_s28 = sadd.s32 1, %s1860_s23 }
   0xb   : > { %s379_s29 = ssub.s32 %s1864_s24, %s1991_s27  ;;  %p392_p0 = scmp.ne.s32.totalorder %s1860_s23, %s1856_s22 }
   0xc   : > { %p380_p1 = scmp.eq.s32.totalorder %s379_s29, 0  ;;  %p393_p2 = scmp.eq.s32.totalorder %s1987_s25, 1 }
   0xd   : > { %p398_p3 = scmp.ne.s32.totalorder %s1856_s22, %s1852_s21  ;;  %p399_p4 = scmp.eq.s32.totalorder %s1615_s26, 1 }
   0xe   : > { %s2002_s30 = scalar_select %p380_p1, %s1860_s23, %s382_s28  }
   0xf   : > { %p2004_p5 = por %p393_p2, %p392_p0  ;;  %p2008_p6 = por %p399_p4, %p398_p3 }
  0x10   : > { %2434 = sst [smem:[#allocation7_spill]] %s2002_s30  ;;  %p1618_p7 = scmp.ge.s32.totalorder %s1864_s24, 1 }
  0x11   : > { %p472_p8 = scmp.lt.s32.totalorder %s1864_s24, 3 }
  0x13   : > { %p473_p9 = pnand %p1618_p7, %p472_p8 }
  0x14   : > { %p524_p10 = scmp.lt.s32.totalorder (!%p473_p9), %s1987_s25, 1  ;;  %s2437_s1 = sld [smem:[#allocation9_spill]] (!%p473_p9) }
  0x15   : > { %476 = sbr.rel (%p473_p9) target bundleno = 4753 (0x1291), region = 84  ;;  %s2438_s23 = sld [smem:[#allocation8_spill]] (!%p473_p9) }
  0x16   : > { %s2439_s2 = sld [smem:[#allocation10_spill]] (!%p473_p9)  ;;  %s2415_s26 = smov (!%p473_p9), 88  }
  0x17   : > { %s2440_s3 = sld [smem:[#allocation11_spill]] (!%p473_p9)  ;;  %s2426_s29 = smov (!%p473_p9), 64  }
  0x18   : > { %s2423_s28 = smov (!%p473_p9), 120   ;;  %s2416_s30 = smov (!%p473_p9), 112  }
  0x19   : > { %s2419_s20 = smov (!%p473_p9), 16  }
  0x1a   : > { %s2016_s18 = scalar_select %p524_p10, %s1987_s25, 1  ;;  %vm534_vm0 = vcmask 261120   ;;  %v1866_v2 = vmov 32.0   ;;  %v579_v14 = vld [vmem:[%s2398_s4 + $0x18] sm:$0xff]  ;;  %v578_v15 = vld [vmem:[%s2398_s4 + $0x10] sm:$0xff]  ;;  %v577_v16 = vld [vmem:[%s2398_s4 + $0x8] sm:$0xff] }
  0x1b   : > { %1758 = vrcp.f32 %v1866_v2  ;;  %599 = vmatpush.msra.mxu0 %v579_v14  ;;  %v576_v17 = vld [vmem:[%s2398_s4] sm:$0xff]  ;;  %vm610_vm5 = vcmask 64512   ;;  %vm880_vm6 = vcmask 130048   ;;  %vm882_vm7 = vcmask 195584  }
  0x1c   : > { %s1620_s19 = sshll.u32 %s2016_s18, 3  ;;  %v1740_v27 = vld [vmem:[%s2439_s2] ss:$0 sm:$0xff]  ;;  %vm992_vm11 = vcmask 523264  }
  0x1d   : > { %s527_s27 = scalar_lea.vmem %s2438_s23, %s1620_s19  ;;  %600 = vmatpush.msra.mxu0 %v578_v15  ;;  %v1741_v30 = vld [vmem:[%s2440_s3] ss:$0 sm:$0xff]  ;;  %s2424_s23 = smov 96  }
  0x1e   : > { %v531_v0 = vld [vmem:[%s527_s27] sm:$0xff]  ;;  %s2422_s27 = smov 80   ;;  %s2414_s19 = smov 72  }
  0x1f   : > { %v535_v1 = vsel %vm534_vm0, %v531_v0, 0.0  ;;  %601 = vmatpush.msra.mxu0 %v577_v16  ;;  %v1742_v33 = vld [vmem:[%s2399_s5] ss:$0 sm:$0xff] }
  0x20   : > { %536 = vadd.xlane.f32.xlu0 %v535_v1 }
  0x21   : > { %v1759_v3 = vpop.eup %1758  ;;  %602 = vmatpush.msra.mxu0 %v576_v17 }
  0x22   : > { %v539_v4 = vmul.f32 32.0, %v1759_v3  ;;  %vm543_vm1 = vweird.f32 %v1759_v3 }
  0x24   : > { %v540_v5 = vsub.f32 1.0, %v539_v4 }
  0x26   : > { %v541_v6 = vmul.f32 %v1759_v3, %v540_v5 }
  0x28   : > { %v542_v7 = vadd.f32 %v1759_v3, %v541_v6 }
  0x2a   : > { %v2027_v8 = vsel %vm543_vm1, %v1759_v3, %v542_v7 }
  0x93   : > { %v537_v9 = vpop.xlane.xlu0 %536 }
  0x94   : > { %v545_v10 = vmul.f32 %v2027_v8, %v537_v9 }
  0x96   : > { %v546_v11 = vsub.f32 %v531_v0, %v545_v10 }
  0x98   : > { %v547_v12 = vmul.f32 %v546_v11, %v546_v11 }
  0x9a   : > { %v548_v13 = vsel %vm534_vm0, %v547_v12, 0.0 }
  0x9b   : > { %549 = vadd.xlane.f32.xlu0 %v548_v13 }
 0x10e   : > { %v550_v18 = vpop.xlane.xlu0 %549 }
 0x10f   : > { %v551_v19 = vmul.f32 %v550_v18, %v2027_v8 }
 0x111   : > { %v552_v20 = vadd.f32 1e-05, %v551_v19 }
 0x113   : > { %1760 = vrsqrt.f32 %v552_v20  ;;  %vm559_vm3 = vweird.f32 %v552_v20 }
 0x119   : > { %v1761_v21 = vpop.eup %1760 }
 0x11a   : > { %v554_v22 = vmul.f32 %v1761_v21, %v552_v20  ;;  %vm560_vm2 = vweird.f32 %v1761_v21 }
 0x11b   : > { %vm561_vm4 = vmor %vm559_vm3, %vm560_vm2 }
 0x11c   : > { %v555_v23 = vmul.f32 %v1761_v21, %v554_v22 }
 0x11e   : > { %v556_v24 = vmul.f32 0.5, %v555_v23 }
 0x120   : > { %v557_v25 = vsub.f32 1.5, %v556_v24 }
 0x122   : > { %v558_v26 = vmul.f32 %v1761_v21, %v557_v25 }
 0x124   : > { %v562_v28 = vsel %vm561_vm4, %v1761_v21, %v558_v26 }
 0x125   : > { %v563_v29 = vmul.f32 %v562_v28, %v546_v11 }
 0x127   : > { %v567_v31 = vmul.f32 %v1740_v27, %v563_v29 }
 0x129   : > { %v2050_v32 = vadd.f32 %v1741_v30, %v567_v31 }
 0x12b   : > { %1621 = vmatmul.msk.f32.vlgmr.msra.gmra.mxu0 %vm534_vm0, %v2050_v32 }
 0x1a8   : > { %v604_v34 = vpop.f32.mrf.mxu0 }
 0x1a9   : > { %v2057_v35 = vadd.f32 %v1742_v33, %v604_v34  ;;  %v887_v34 = vld [vmem:[%s2400_s6 + $0x18] sm:$0xff] }
 0x1ab   : > { %674 = vrot.lane.b32.xlu0 %v2057_v35, %s2415_s26  ;;  %646 = vrot.lane.b32.xlu2 %v2057_v35, %s2426_s29  ;;  %s2441_s26 = scalar_lea.vmem %s2437_s1, %s2016_s18  ;;  %s2421_s18 = smov 104  }
 0x1ac   : > { %608 = vrot.lane.b32.xlu1 %v2057_v35, %s2424_s23  ;;  %v2085_v43 = vld [vmem:[%s2441_s26] ss:$0 sm:$0xff]  ;;  %s2418_s26 = smov 40   ;;  %s2442_s1 = smov 64  }
 0x1ad   : > { %s2444_s23 = smov 120   ;;  %s2446_s29 = smov 112  }
 0x1b3   : > { %739 = vrot.lane.b32.xlu0 %v2057_v35, %s2422_s27  ;;  %672 = vrot.lane.b32.xlu2 %v2057_v35, %s2423_s28  ;;  %s2445_s27 = smov 80   ;;  %s2447_s28 = smov 88  }
 0x1bb   : > { %737 = vrot.lane.b32.xlu0 %v2057_v35, %s2416_s30  ;;  %804 = vrot.lane.b32.xlu2 %v2057_v35, %s2414_s19  ;;  %s2417_s30 = smov 48   ;;  %s2420_s19 = smov 56  }
 0x205   : > { %v647_v36 = vpop.permute.xlu2 %646 }
 0x206   : > { %667 = vmatpush.msra.mxu3 %v647_v36  ;;  %v885_v36 = vld [vmem:[%s2400_s6 + $0x8] sm:$0xff] }
 0x20d   : > { %v673_v37 = vpop.permute.xlu2 %672 }
 0x215   : > { %v805_v38 = vpop.permute.xlu2 %804 }
 0x216   : > { %1631 = vmatpush.xpose.msk.msrb.mxu0 %vm610_vm5, %v805_v38 }
 0x21d   : > { %v675_v39 = vpop.permute.xlu0 %674 }
 0x21e   : > { %v609_v40 = vpop.permute.xlu1 %608  ;;  %1625 = vmatpush.xpose.msk.msrb.mxu3 %vm610_vm5, %v675_v39 }
 0x21f   : > { %1622 = vmatpush.xpose.msk.msra.mxu1 %vm610_vm5, %v609_v40 }
 0x222   : > { %1623 = vmatmul.msk.f32.vlgmr.msra.gmra.mxu1 %vm610_vm5, %v2057_v35 }
 0x225   : > { %v740_v41 = vpop.permute.xlu0 %739 }
 0x226   : > { %1628 = vmatpush.xpose.msk.msrb.mxu1 %vm610_vm5, %v740_v41 }
 0x22a   : > { %907 = vmatpush.msra.mxu1 %v887_v34  ;;  %v1639_v34 = vld [vmem:[%s2398_s4 + $0x30] sm:$0xff] }
 0x22d   : > { %v738_v42 = vpop.permute.xlu0 %737 }
 0x22e   : > { %1629 = vmatmul.msk.f32.vlgmr.msrb.gmra.mxu1 %vm610_vm5, %v738_v42 }
 0x29f   : > { %v632_v44 = vpop.f32.mrf.mxu1 }
 0x2a0   : > { %v633_v45 = vadd.f32 %v2085_v43, %v632_v44 }
 0x2a2   : > { %v635_v46 = vsel %vm610_vm5, %v633_v45, -inf }
 0x2a3   : > { %636 = vmax.xlane.f32.xlu1 %v635_v46 }
 0x2ab   : > { %v762_v47 = vpop.f32.mrf.mxu1 }
 0x2ac   : > { %v763_v48 = vadd.f32 %v2085_v43, %v762_v47 }
 0x2ae   : > { %v765_v49 = vsel %vm610_vm5, %v763_v48, -inf }
 0x2af   : > { %766 = vmax.xlane.f32.xlu0 %v765_v49 }
 0x2c3   : > { %776 = vrot.lane.b32.xlu0 %v2057_v35, %s2417_s30  ;;  %s2425_s30 = smov 8  }
 0x316   : > { %v637_v50 = vpop.xlane.xlu1 %636 }
 0x317   : > { %v638_v51 = vsub.f32 %v633_v45, %v637_v50  ;;  %v1743_v45 = vld [vmem:[%s2401_s7] ss:$0 sm:$0xff] }
 0x319   : > { %v639_v52 = vmul.f32 1.442695, %v638_v51 }
 0x31b   : > { %1762 = vpow2.f32 %v639_v52 }
 0x321   : > { %v1763_v53 = vpop.eup %1762 }
 0x322   : > { %v641_v54 = vsel %vm610_vm5, %v1763_v53, 0.0  ;;  %v767_v56 = vpop.xlane.xlu0 %766 }
 0x323   : > { %642 = vadd.xlane.f32.xlu2 %v641_v54  ;;  %v768_v1 = vsub.f32 %v763_v48, %v767_v56  ;;  %v949_v56 = vld [vmem:[%s2404_s10 + $0x8] sm:$0xff] }
 0x325   : > { %v769_v2 = vmul.f32 1.442695, %v768_v1  ;;  %v983_v1 = vld [vmem:[%s2406_s12 + $0x18] sm:$0xff] }
 0x335   : > { %v777_v60 = vpop.permute.xlu0 %776 }
 0x33b   : > { %802 = vrot.lane.b32.xlu2 %v2057_v35, %s2421_s18  ;;  %s2449_s18 = smov 104  }
 0x396   : > { %v643_v55 = vpop.xlane.xlu2 %642 }
 0x397   : > { %1764 = vrcp.f32 %v643_v55  ;;  %v951_v55 = vld [vmem:[%s2404_s10 + $0x18] sm:$0xff] }
 0x398   : > { %1766 = vpow2.f32 %v769_v2 }
 0x39d   : > { %v1765_v57 = vpop.eup %1764 }
 0x39e   : > { %v803_v58 = vpop.permute.xlu2 %802  ;;  %v645_v59 = vmul.f32 %v1765_v57, %v1763_v53  ;;  %v1767_v6 = vpop.eup %1766  ;;  %v948_v57 = vld [vmem:[%s2404_s10] sm:$0xff] }
 0x39f   : > { %1632 = vmatmul.msk.f32.vlgmr.msrb.gmra.mxu0 %vm610_vm5, %v803_v58  ;;  %v771_v7 = vsel %vm610_vm5, %v1767_v6, 0.0  ;;  %v987_v58 = vld [vmem:[%s2406_s12 + $0x38] sm:$0xff] }
 0x3a0   : > { %1624 = vmatmul.msk.f32.vlgmr.msra.gmra.mxu3 %vm610_vm5, %v645_v59  ;;  %v986_v59 = vld [vmem:[%s2406_s12 + $0x30] sm:$0xff]  ;;  %1004 = vmatpush.msra.mxu0 %v987_v58 }
 0x3a1   : > { %797 = vmatpush.msra.mxu3 %v777_v60  ;;  %v985_v60 = vld [vmem:[%s2406_s12 + $0x28] sm:$0xff] }
 0x3a2   : > { %1005 = vmatpush.msra.mxu0 %v986_v59 }
 0x3a4   : > { %1006 = vmatpush.msra.mxu0 %v985_v60 }
 0x3a8   : > { %1626 = vmatmul.msk.f32.vlgmr.msrb.gmra.mxu3 %vm610_vm5, %v673_v37  ;;  %v884_v37 = vld [vmem:[%s2400_s6] sm:$0xff] }
 0x3a9   : > { %971 = vmatpush.msrb.mxu3 %v951_v55 }
 0x41c   : > { %v827_v61 = vpop.f32.mrf.mxu0 }
 0x41d   : > { %v828_v62 = vadd.f32 %v2085_v43, %v827_v61 }
 0x41f   : > { %v830_v63 = vsel %vm610_vm5, %v828_v62, -inf }
 0x420   : > { %831 = vmax.xlane.f32.xlu2 %v830_v63  ;;  %v984_v63 = vld [vmem:[%s2406_s12 + $0x20] sm:$0xff] }
 0x421   : > { %1007 = vmatpush.msra.mxu0 %v984_v63 }
 0x423   : > { %v2101_v0 = vpop.f32.mrf.mxu3  ;;  %1008 = vmatpush.msra.mxu0 %v983_v1 }
 0x42b   : > { %v697_v3 = vpop.f32.mrf.mxu3 }
 0x42c   : > { %v698_v4 = vadd.f32 %v2085_v43, %v697_v3 }
 0x42e   : > { %v700_v5 = vsel %vm610_vm5, %v698_v4, -inf }
 0x42f   : > { %701 = vmax.xlane.f32.xlu1 %v700_v5 }
 0x437   : > { %772 = vadd.xlane.f32.xlu1 %v771_v7 }
 0x438   : > { %841 = vrot.lane.b32.xlu2 %v2057_v35, %s2418_s26  ;;  %s2427_s26 = smov 24  }
 0x493   : > { %v832_v9 = vpop.xlane.xlu2 %831 }
 0x494   : > { %v833_v10 = vsub.f32 %v828_v62, %v832_v9  ;;  %v1744_v9 = vld [vmem:[%s2402_s8] ss:$0 sm:$0xff] }
 0x496   : > { %v834_v11 = vmul.f32 1.442695, %v833_v10 }
 0x498   : > { %1768 = vpow2.f32 %v834_v11 }
 0x49b   : > { %v842_v28 = vpop.permute.xlu2 %841 }
 0x49e   : > { %v1769_v12 = vpop.eup %1768 }
 0x49f   : > { %v836_v13 = vsel %vm610_vm5, %v1769_v12, 0.0 }
 0x4a0   : > { %837 = vadd.xlane.f32.xlu1 %v836_v13 }
 0x4a2   : > { %v702_v14 = vpop.xlane.xlu1 %701 }
 0x4a3   : > { %v703_v15 = vsub.f32 %v698_v4, %v702_v14 }
 0x4a5   : > { %v704_v16 = vmul.f32 1.442695, %v703_v15  ;;  %v982_v15 = vld [vmem:[%s2406_s12 + $0x10] sm:$0xff] }
 0x4a6   : > { %1009 = vmatpush.msra.mxu0 %v982_v15 }
 0x4a7   : > { %1770 = vpow2.f32 %v704_v16  ;;  %v981_v16 = vld [vmem:[%s2406_s12 + $0x8] sm:$0xff] }
 0x4a8   : > { %1010 = vmatpush.msra.mxu0 %v981_v16 }
 0x4aa   : > { %v773_v17 = vpop.xlane.xlu1 %772 }
 0x4ab   : > { %1772 = vrcp.f32 %v773_v17  ;;  %v980_v17 = vld [vmem:[%s2406_s12] sm:$0xff] }
 0x4ac   : > { %1011 = vmatpush.msra.mxu0 %v980_v17 }
 0x4ad   : > { %v1771_v18 = vpop.eup %1770 }
 0x4ae   : > { %v706_v19 = vsel %vm610_vm5, %v1771_v18, 0.0 }
 0x4af   : > { %707 = vadd.xlane.f32.xlu1 %v706_v19 }
 0x4b1   : > { %v1773_v20 = vpop.eup %1772 }
 0x4b2   : > { %v775_v21 = vmul.f32 %v1773_v20, %v1767_v6 }
 0x4b4   : > { %1630 = vmatmul.msk.f32.vlgmr.msra.gmra.mxu3 %vm610_vm5, %v775_v21 }
 0x4c8   : > { %711 = vrot.lane.b32.xlu1 %v2057_v35, %s2420_s19  ;;  %v886_v35 = vld [vmem:[%s2400_s6 + $0x10] sm:$0xff]  ;;  %s2450_s19 = smov 56  }
 0x4c9   : > { %908 = vmatpush.msra.mxu1 %v886_v35  ;;  %v1638_v35 = vld [vmem:[%s2398_s4 + $0x28] sm:$0xff] }
 0x4cb   : > { %909 = vmatpush.msra.mxu1 %v885_v36  ;;  %v1637_v36 = vld [vmem:[%s2398_s4 + $0x20] sm:$0xff] }
 0x4cd   : > { %910 = vmatpush.msra.mxu1 %v884_v37 }
 0x513   : > { %v838_v22 = vpop.xlane.xlu1 %837 }
 0x522   : > { %v708_v23 = vpop.xlane.xlu1 %707 }
 0x523   : > { %1774 = vrcp.f32 %v708_v23 }
 0x524   : > { %1776 = vrcp.f32 %v838_v22  ;;  %v1747_v22 = vld [vmem:[%s2407_s13] ss:$0 sm:$0xff] }
 0x529   : > { %v1775_v24 = vpop.eup %1774 }
 0x52a   : > { %v710_v27 = vmul.f32 %v1775_v24, %v1771_v18  ;;  %v1777_v29 = vpop.eup %1776  ;;  %v1746_v18 = vld [vmem:[%s2405_s11] ss:$0 sm:$0xff] }
 0x52b   : > { %v840_v30 = vmul.f32 %v1777_v29, %v1769_v12  ;;  %v1745_v12 = vld [vmem:[%s2403_s9] ss:$0 sm:$0xff] }
 0x537   : > { %v799_v25 = vpop.f32.mrf.mxu3 }
 0x538   : > { %872 = vrot.lane.b32.xlu0 %v799_v25, %s2419_s20  ;;  %s2451_s20 = smov 40  }
 0x53a   : > { %v712_v26 = vpop.permute.xlu1 %711 }
 0x53b   : > { %732 = vmatpush.msra.mxu2 %v712_v26 }
 0x53c   : > { %1627 = vmatmul.msk.f32.vlgmr.msra.gmra.mxu2 %vm610_vm5, %v710_v27 }
 0x53d   : > { %862 = vmatpush.msrb.mxu2 %v842_v28 }
 0x544   : > { %1633 = vmatmul.msk.f32.vlgmr.msrb.gmra.mxu2 %vm610_vm5, %v840_v30 }
 0x5aa   : > { %v873_v40 = vpop.permute.xlu0 %872 }
 0x5bf   : > { %v734_v31 = vpop.f32.mrf.mxu2 }
 0x5c0   : > { %868 = vrot.lane.b32.xlu1 %v734_v31, %s2425_s30  ;;  %s2448_s30 = smov 72  }
 0x5c7   : > { %v864_v33 = vpop.f32.mrf.mxu2 }
 0x5c8   : > { %876 = vrot.lane.b32.xlu1 %v864_v33, %s2427_s26  ;;  %v1640_v33 = vld [vmem:[%s2398_s4 + $0x38] sm:$0xff]  ;;  %s2443_s26 = smov 96  }
 0x5c9   : > { %1074 = vmatpush.msra.mxu2 %v1640_v33 }
 0x5cb   : > { %1075 = vmatpush.msra.mxu2 %v1639_v34 }
 0x5cd   : > { %1076 = vmatpush.msra.mxu2 %v1638_v35 }
 0x5cf   : > { %1077 = vmatpush.msra.mxu2 %v1637_v36 }
 0x632   : > { %v869_v38 = vpop.permute.xlu1 %868 }
 0x633   : > { %v879_v39 = vsel %vm610_vm5, %v2101_v0, %v869_v38 }
 0x634   : > { %v881_v41 = vsel %vm880_vm6, %v879_v39, %v873_v40 }
 0x63a   : > { %v877_v42 = vpop.permute.xlu1 %876 }
 0x63b   : > { %v883_v44 = vsel %vm882_vm7, %v881_v41, %v877_v42 }
 0x63c   : > { %1634 = vmatmul.msk.f32.vlgmr.msra.gmra.mxu1 %vm534_vm0, %v883_v44 }
 0x6b9   : > { %v912_v46 = vpop.f32.mrf.mxu1 }
 0x6ba   : > { %v913_v47 = vadd.f32 %v1743_v45, %v912_v46 }
 0x6bc   : > { %v915_v48 = vadd.f32 %v913_v47, %v2050_v32  ;;  %v950_v32 = vld [vmem:[%s2404_s10 + $0x10] sm:$0xff]  ;;  %v1748_v47 = vld [vmem:[%s2408_s14] ss:$0 sm:$0xff] }
 0x6bd   : > { %972 = vmatpush.msrb.mxu3 %v950_v32 }
 0x6be   : > { %v918_v49 = vsel %vm534_vm0, %v915_v48, 0.0 }
 0x6bf   : > { %919 = vadd.xlane.f32.xlu2 %v918_v49  ;;  %973 = vmatpush.msrb.mxu3 %v949_v56 }
 0x6c1   : > { %974 = vmatpush.msrb.mxu3 %v948_v57 }
 0x732   : > { %v920_v50 = vpop.xlane.xlu2 %919 }
 0x733   : > { %v921_v51 = vmul.f32 %v920_v50, %v2027_v8  ;;  %v1749_v50 = vld [vmem:[%s2409_s15] ss:$0 sm:$0xff] }
 0x735   : > { %v922_v52 = vsub.f32 %v915_v48, %v921_v51 }
 0x737   : > { %v923_v53 = vmul.f32 %v922_v52, %v922_v52 }
 0x739   : > { %v924_v54 = vsel %vm534_vm0, %v923_v53, 0.0  ;;  %v1750_v53 = vld [vmem:[%s2399_s5 + $0x1] ss:$0 sm:$0xff] }
 0x73a   : > { %925 = vadd.xlane.f32.xlu0 %v924_v54 }
 0x7ad   : > { %v926_v61 = vpop.xlane.xlu0 %925 }
 0x7ae   : > { %v927_v62 = vmul.f32 %v926_v61, %v2027_v8 }
 0x7b0   : > { %v928_v0 = vadd.f32 1e-05, %v927_v62 }
 0x7b2   : > { %1778 = vrsqrt.f32 %v928_v0  ;;  %vm935_vm9 = vweird.f32 %v928_v0 }
 0x7b8   : > { %v1779_v2 = vpop.eup %1778 }
 0x7b9   : > { %v930_v3 = vmul.f32 %v1779_v2, %v928_v0  ;;  %vm936_vm8 = vweird.f32 %v1779_v2 }
 0x7ba   : > { %vm937_vm10 = vmor %vm935_vm9, %vm936_vm8 }
 0x7bb   : > { %v931_v4 = vmul.f32 %v1779_v2, %v930_v3 }
 0x7bd   : > { %v932_v5 = vmul.f32 0.5, %v931_v4 }
 0x7bf   : > { %v933_v6 = vsub.f32 1.5, %v932_v5 }
 0x7c1   : > { %v934_v7 = vmul.f32 %v1779_v2, %v933_v6 }
 0x7c3   : > { %v938_v10 = vsel %vm937_vm10, %v1779_v2, %v934_v7 }
 0x7c4   : > { %v939_v11 = vmul.f32 %v938_v10, %v922_v52 }
 0x7c6   : > { %v943_v13 = vmul.f32 %v1744_v9, %v939_v11 }
 0x7c8   : > { %v947_v14 = vadd.f32 %v1745_v12, %v943_v13 }
 0x7ca   : > { %1635 = vmatmul.msk.f32.vlgmr.msrb.gmra.mxu3 %vm534_vm0, %v947_v14 }
 0x84d   : > { %v976_v19 = vpop.f32.mrf.mxu3 }
 0x84e   : > { %v977_v20 = vadd.f32 %v1746_v18, %v976_v19 }
 0x850   : > { %v979_v21 = vmax.f32 %v977_v20, 0.0 }
 0x852   : > { %1636 = vmatmul.msk.f32.vlgmr.msra.gmra.mxu0 %vm992_vm11, %v979_v21 }
 0x8cf   : > { %v1013_v23 = vpop.f32.mrf.mxu0 }
 0x8d0   : > { %v1014_v24 = vadd.f32 %v1747_v22, %v1013_v23 }
 0x8d2   : > { %v1016_v25 = vadd.f32 %v1014_v24, %v947_v14 }
 0x8d4   : > { %v1019_v26 = vsel %vm534_vm0, %v1016_v25, 0.0 }
 0x8d5   : > { %1020 = vadd.xlane.f32.xlu1 %v1019_v26 }
 0x948   : > { %v1021_v27 = vpop.xlane.xlu1 %1020 }
 0x949   : > { %v1022_v28 = vmul.f32 %v1021_v27, %v2027_v8 }
 0x94b   : > { %v1023_v29 = vsub.f32 %v1016_v25, %v1022_v28 }
 0x94d   : > { %v1024_v30 = vmul.f32 %v1023_v29, %v1023_v29 }
 0x94f   : > { %v1025_v31 = vsel %vm534_vm0, %v1024_v30, 0.0 }
 0x950   : > { %1026 = vadd.xlane.f32.xlu2 %v1025_v31 }
 0x9c3   : > { %v1027_v37 = vpop.xlane.xlu2 %1026 }
 0x9c4   : > { %v1028_v38 = vmul.f32 %v1027_v37, %v2027_v8 }
 0x9c6   : > { %v1029_v39 = vadd.f32 1e-05, %v1028_v38 }
 0x9c8   : > { %1780 = vrsqrt.f32 %v1029_v39  ;;  %vm1036_vm13 = vweird.f32 %v1029_v39 }
 0x9ce   : > { %v1781_v40 = vpop.eup %1780 }
 0x9cf   : > { %v1031_v41 = vmul.f32 %v1781_v40, %v1029_v39  ;;  %vm1037_vm12 = vweird.f32 %v1781_v40 }
 0x9d0   : > { %vm1038_vm14 = vmor %vm1036_vm13, %vm1037_vm12 }
 0x9d1   : > { %v1032_v42 = vmul.f32 %v1781_v40, %v1031_v41 }
 0x9d3   : > { %v1033_v44 = vmul.f32 0.5, %v1032_v42 }
 0x9d5   : > { %v1034_v45 = vsub.f32 1.5, %v1033_v44 }
 0x9d7   : > { %v1035_v46 = vmul.f32 %v1781_v40, %v1034_v45 }
 0x9d9   : > { %v1039_v48 = vsel %vm1038_vm14, %v1781_v40, %v1035_v46 }
 0x9da   : > { %v1040_v49 = vmul.f32 %v1039_v48, %v1023_v29 }
 0x9dc   : > { %v1044_v51 = vmul.f32 %v1748_v47, %v1040_v49 }
 0x9de   : > { %v2215_v52 = vadd.f32 %v1749_v50, %v1044_v51 }
 0x9e0   : > { %1642 = vmatmul.msk.f32.vlgmr.msra.gmra.mxu2 %vm534_vm0, %v2215_v52 }
 0xa63   : > { %v1079_v54 = vpop.f32.mrf.mxu2 }
 0xa64   : > { %v2222_v55 = vadd.f32 %v1750_v53, %v1079_v54  ;;  %v1658_v53 = vld [vmem:[%s2400_s6 + $0x38] sm:$0xff]  ;;  %v1657_v54 = vld [vmem:[%s2400_s6 + $0x30] sm:$0xff] }
 0xa66   : > { %1120 = vrot.lane.b32.xlu2 %v2222_v55, %s2442_s1  ;;  %1083 = vrot.lane.b32.xlu0 %v2222_v55, %s2443_s26  ;;  %s2452_s1 = smov 48   ;;  %s2453_s26 = smov 8  }
 0xa6e   : > { %1146 = vrot.lane.b32.xlu0 %v2222_v55, %s2444_s23  ;;  %s2454_s23 = smov 24  }
 0xa76   : > { %1213 = vrot.lane.b32.xlu0 %v2222_v55, %s2445_s27  ;;  %s2455_s27 = smov 16  }
 0xa7e   : > { %1211 = vrot.lane.b32.xlu0 %v2222_v55, %s2446_s29 }
 0xac0   : > { %v1121_v32 = vpop.permute.xlu2 %1120 }
 0xac1   : > { %1141 = vmatpush.msra.mxu3 %v1121_v32  ;;  %v1655_v32 = vld [vmem:[%s2400_s6 + $0x20] sm:$0xff] }
 0xad8   : > { %v1084_v56 = vpop.permute.xlu0 %1083 }
 0xad9   : > { %1643 = vmatpush.xpose.msk.msrb.mxu1 %vm610_vm5, %v1084_v56 }
 0xadc   : > { %1644 = vmatmul.msk.f32.vlgmr.msrb.gmra.mxu1 %vm610_vm5, %v2222_v55 }
 0xae0   : > { %v1147_v57 = vpop.permute.xlu0 %1146 }
 0xae8   : > { %v1214_v58 = vpop.permute.xlu0 %1213 }
 0xae9   : > { %1649 = vmatpush.xpose.msk.msrb.mxu3 %vm610_vm5, %v1214_v58 }
 0xaf0   : > { %v1212_v10 = vpop.permute.xlu0 %1211 }
 0xb59   : > { %v1106_v59 = vpop.f32.mrf.mxu1 }
 0xb5a   : > { %v1107_v60 = vadd.f32 %v2085_v43, %v1106_v59 }
 0xb5c   : > { %v1109_v61 = vsel %vm610_vm5, %v1107_v60, -inf }
 0xb5d   : > { %1110 = vmax.xlane.f32.xlu1 %v1109_v61 }
 0xb76   : > { %1148 = vrot.lane.b32.xlu1 %v2222_v55, %s2447_s28 }
 0xb7e   : > { %1278 = vrot.lane.b32.xlu1 %v2222_v55, %s2448_s30  ;;  %s521_s30 = sand.u32 1, %s1856_s22  }
 0xbd0   : > { %v1111_v62 = vpop.xlane.xlu1 %1110 }
 0xbd1   : > { %v1112_v63 = vsub.f32 %v1107_v60, %v1111_v62  ;;  %v1751_v62 = vld [vmem:[%s2401_s7 + $0x1] ss:$0 sm:$0xff] }
 0xbd3   : > { %v1113_v0 = vmul.f32 1.442695, %v1112_v63 }
 0xbd5   : > { %1782 = vpow2.f32 %v1113_v0 }
 0xbdb   : > { %v1783_v1 = vpop.eup %1782 }
 0xbdc   : > { %v1115_v2 = vsel %vm610_vm5, %v1783_v1, 0.0 }
 0xbdd   : > { %1116 = vadd.xlane.f32.xlu2 %v1115_v2 }
 0xbe8   : > { %v1149_v3 = vpop.permute.xlu1 %1148 }
 0xbe9   : > { %1646 = vmatpush.xpose.msk.msrb.mxu2 %vm610_vm5, %v1149_v3 }
 0xbec   : > { %1647 = vmatmul.msk.f32.vlgmr.msrb.gmra.mxu2 %vm610_vm5, %v1147_v57 }
 0xbf0   : > { %v1279_v4 = vpop.permute.xlu1 %1278 }
 0xbf1   : > { %1652 = vmatpush.xpose.msk.msra.mxu2 %vm610_vm5, %v1279_v4 }
 0xbf5   : > { %1276 = vrot.lane.b32.xlu2 %v2222_v55, %s2449_s18  ;;  %s1619_s18 = sshll.u32 %s521_s30, 3 }
 0xbf6   : > { %s523_s2 = scalar_lea.vmem [#allocation2], %s1619_s18  ;;  %s1822_s18 = scalar_lea.hbm %s2410_s16, 16 }
 0xc50   : > { %v1117_v5 = vpop.xlane.xlu2 %1116 }
 0xc51   : > { %1784 = vrcp.f32 %v1117_v5 }
 0xc57   : > { %v1785_v6 = vpop.eup %1784 }
 0xc58   : > { %v1119_v7 = vmul.f32 %v1785_v6, %v1783_v1  ;;  %v1277_v9 = vpop.permute.xlu2 %1276 }
 0xc59   : > { %1653 = vmatmul.msk.f32.vlgmr.msra.gmra.mxu2 %vm610_vm5, %v1277_v9  ;;  %v1666_v9 = vld [vmem:[%s2404_s10 + $0x38] sm:$0xff] }
 0xc5a   : > { %1645 = vmatmul.msk.f32.vlgmr.msra.gmra.mxu3 %vm610_vm5, %v1119_v7 }
 0xc5b   : > { %1381 = vmatpush.msra.mxu3 %v1658_v53 }
 0xc5d   : > { %1382 = vmatpush.msra.mxu3 %v1657_v54 }
 0xc62   : > { %1650 = vmatmul.msk.f32.vlgmr.msrb.gmra.mxu3 %vm610_vm5, %v1212_v10  ;;  %v1664_v10 = vld [vmem:[%s2404_s10 + $0x28] sm:$0xff] }
 0xc6f   : > { %v1171_v11 = vpop.f32.mrf.mxu2 }
 0xc70   : > { %v1172_v12 = vadd.f32 %v2085_v43, %v1171_v11  ;;  %v1663_v11 = vld [vmem:[%s2404_s10 + $0x20] sm:$0xff] }
 0xc72   : > { %v1174_v13 = vsel %vm610_vm5, %v1172_v12, -inf }
 0xc73   : > { %1175 = vmax.xlane.f32.xlu1 %v1174_v13  ;;  %v1675_v13 = vld [vmem:[%s2406_s12 + $0x70] sm:$0xff] }
 0xcdc   : > { %v1301_v14 = vpop.f32.mrf.mxu2 }
 0xcdd   : > { %v1302_v15 = vadd.f32 %v2085_v43, %v1301_v14  ;;  %v2256_v16 = vpop.f32.mrf.mxu3  ;;  %v1674_v14 = vld [vmem:[%s2406_s12 + $0x68] sm:$0xff] }
 0xcdf   : > { %v1304_v17 = vsel %vm610_vm5, %v1302_v15, -inf }
 0xce0   : > { %1305 = vmax.xlane.f32.xlu2 %v1304_v17  ;;  %v1673_v17 = vld [vmem:[%s2406_s12 + $0x60] sm:$0xff] }
 0xce5   : > { %v1236_v18 = vpop.f32.mrf.mxu3 }
 0xce6   : > { %v1237_v19 = vadd.f32 %v2085_v43, %v1236_v18  ;;  %v1176_v20 = vpop.xlane.xlu1 %1175 }
 0xce7   : > { %v1177_v21 = vsub.f32 %v1172_v12, %v1176_v20  ;;  %v1676_v12 = vld [vmem:[%s2406_s12 + $0x78] sm:$0xff] }
 0xce8   : > { %v1239_v22 = vsel %vm610_vm5, %v1237_v19, -inf  ;;  %1483 = vmatpush.msrb.mxu2 %v1676_v12 }
 0xce9   : > { %v1178_v23 = vmul.f32 1.442695, %v1177_v21  ;;  %1240 = vmax.xlane.f32.xlu0 %v1239_v22 }
 0xcea   : > { %1484 = vmatpush.msrb.mxu2 %v1675_v13 }
 0xceb   : > { %1786 = vpow2.f32 %v1178_v23 }
 0xcec   : > { %1485 = vmatpush.msrb.mxu2 %v1674_v14 }
 0xcee   : > { %1486 = vmatpush.msrb.mxu2 %v1673_v17 }
 0xcf1   : > { %v1787_v24 = vpop.eup %1786 }
 0xcf2   : > { %v1180_v25 = vsel %vm610_vm5, %v1787_v24, 0.0 }
 0xcf3   : > { %1181 = vadd.xlane.f32.xlu1 %v1180_v25 }
 0xd0c   : > { %1185 = vrot.lane.b32.xlu1 %v2222_v55, %s2450_s19  ;;  %s1682_s19 = sshll.u32 %s1987_s25, 3  ;;  %s1544_s25 = sshll.u32 %s523_s2, 4  ;;  %s1545_s25 = int_to_ptr.vmem [resolvable:$true] %s1544_s25 }
 0xd53   : > { %v1306_v26 = vpop.xlane.xlu2 %1305 }
 0xd54   : > { %v1307_v27 = vsub.f32 %v1302_v15, %v1306_v26  ;;  %v1752_v26 = vld [vmem:[%s2402_s8 + $0x1] ss:$0 sm:$0xff] }
 0xd56   : > { %v1308_v28 = vmul.f32 1.442695, %v1307_v27 }
 0xd58   : > { %1788 = vpow2.f32 %v1308_v28 }
 0xd5c   : > { %v1241_v29 = vpop.xlane.xlu0 %1240 }
 0xd5d   : > { %v1242_v43 = vsub.f32 %v1237_v19, %v1241_v29  ;;  %v1672_v19 = vld [vmem:[%s2406_s12 + $0x58] sm:$0xff]  ;;  %v1753_v29 = vld [vmem:[%s2403_s9 + $0x1] ss:$0 sm:$0xff] }
 0xd5e   : > { %v1789_v30 = vpop.eup %1788  ;;  %1487 = vmatpush.msrb.mxu2 %v1672_v19 }
 0xd5f   : > { %v1243_v31 = vmul.f32 1.442695, %v1242_v43  ;;  %v1310_v33 = vsel %vm610_vm5, %v1789_v30, 0.0 }
 0xd60   : > { %1311 = vadd.xlane.f32.xlu2 %v1310_v33  ;;  %v1670_v33 = vld [vmem:[%s2406_s12 + $0x48] sm:$0xff] }
 0xd61   : > { %1790 = vpow2.f32 %v1243_v31  ;;  %v1671_v31 = vld [vmem:[%s2406_s12 + $0x50] sm:$0xff] }
 0xd62   : > { %1488 = vmatpush.msrb.mxu2 %v1671_v31 }
 0xd64   : > { %1489 = vmatpush.msrb.mxu2 %v1670_v33 }
 0xd66   : > { %v1182_v36 = vpop.xlane.xlu1 %1181 }
 0xd67   : > { %v1791_v34 = vpop.eup %1790  ;;  %1792 = vrcp.f32 %v1182_v36 }
 0xd68   : > { %v1245_v35 = vsel %vm610_vm5, %v1791_v34, 0.0 }
 0xd69   : > { %1246 = vadd.xlane.f32.xlu0 %v1245_v35  ;;  %v1754_v35 = vld [vmem:[%s2405_s11 + $0x1] ss:$0 sm:$0xff] }
 0xd6d   : > { %v1793_v37 = vpop.eup %1792 }
 0xd6e   : > { %v1184_v38 = vmul.f32 %v1793_v37, %v1787_v24 }
 0xd78   : > { %1315 = vrot.lane.b32.xlu2 %v2222_v55, %s2451_s20  ;;  %s1532_s20 = scalar_lea.sflag [#allocation3], %s521_s30 }
 0xd7d   : > { %1250 = vrot.lane.b32.xlu0 %v2222_v55, %s2452_s1  ;;  %v1656_v55 = vld [vmem:[%s2400_s6 + $0x28] sm:$0xff] }
 0xd7e   : > { %v1186_v39 = vpop.permute.xlu1 %1185  ;;  %1383 = vmatpush.msra.mxu3 %v1656_v55 }
 0xd7f   : > { %1206 = vmatpush.msra.mxu1 %v1186_v39  ;;  %v1755_v39 = vld [vmem:[%s2407_s13 + $0x1] ss:$0 sm:$0xff] }
 0xd80   : > { %1648 = vmatmul.msk.f32.vlgmr.msra.gmra.mxu1 %vm610_vm5, %v1184_v38  ;;  %1384 = vmatpush.msra.mxu3 %v1655_v32 }
 0xdd3   : > { %v1312_v40 = vpop.xlane.xlu2 %1311 }
 0xdd4   : > { %1794 = vrcp.f32 %v1312_v40 }
 0xdda   : > { %v1795_v41 = vpop.eup %1794 }
 0xddb   : > { %v1314_v42 = vmul.f32 %v1795_v41, %v1789_v30  ;;  %v1316_v44 = vpop.permute.xlu2 %1315 }
 0xddc   : > { %1336 = vmatpush.msrb.mxu1 %v1316_v44  ;;  %v1247_v45 = vpop.xlane.xlu0 %1246 }
 0xddd   : > { %1654 = vmatmul.msk.f32.vlgmr.msrb.gmra.mxu1 %vm610_vm5, %v1314_v42  ;;  %1796 = vrcp.f32 %v1247_v45 }
 0xde3   : > { %v1797_v46 = vpop.eup %1796 }
 0xde4   : > { %v1249_v47 = vmul.f32 %v1797_v46, %v1791_v34  ;;  %v1669_v34 = vld [vmem:[%s2406_s12 + $0x40] sm:$0xff] }
 0xde5   : > { %1490 = vmatpush.msrb.mxu2 %v1669_v34 }
 0xdef   : > { %v1251_v48 = vpop.permute.xlu0 %1250 }
 0xdf0   : > { %1271 = vmatpush.msrb.mxu0 %v1251_v48 }
 0xdf1   : > { %1651 = vmatmul.msk.f32.vlgmr.msrb.gmra.mxu0 %vm610_vm5, %v1249_v47 }
 0xdf2   : > { %1449 = vmatpush.msra.mxu0 %v1666_v9 }
 0xdfd   : > { %v1208_v49 = vpop.f32.mrf.mxu1 }
 0xdfe   : > { %1342 = vrot.lane.b32.xlu0 %v1208_v49, %s2453_s26 }
 0xe5a   : > { %v1338_v50 = vpop.f32.mrf.mxu1 }
 0xe5b   : > { %1350 = vrot.lane.b32.xlu2 %v1338_v50, %s2454_s23 }
 0xe6e   : > { %v1273_v51 = vpop.f32.mrf.mxu0 }
 0xe6f   : > { %1346 = vrot.lane.b32.xlu1 %v1273_v51, %s2455_s27  ;;  %s1542_s27 = scalar_lea.hbm %s2410_s16, %s1682_s19 }
 0xe70   : > { %v1343_v56 = vpop.permute.xlu0 %1342  ;;  %s1546_s3 = sshll.u32 %s1542_s27, 4  ;;  %s1547_s3 = int_to_ptr.hbm [resolvable:$true] %s1546_s3 }
 0xe71   : > { %v1353_v57 = vsel %vm610_vm5, %v2256_v16, %v1343_v56  ;;  %s1816_s1 = sshra.s32 %s1547_s3, 4  ;;  %s1817_s1 = int_to_ptr.hbm [resolvable:$true] %s1816_s1 }
 0xe72   : > { %s1818_s19 = scalar_lea.hbm %s1817_s1, 8  ;;  %p1823_p0 = scmp.lt.s32.totalorder %s1817_s1, %s2410_s16 }
 0xe73   : > { %p1819_p11 = scmp.ne.s32.totalorder %s1817_s1, %s1818_s19  ;;  %p1824_p1 = scmp.lt.s32.totalorder %s1822_s18, %s1818_s19 }
 0xe75   : > { %p1820_p12 = pnand %p1819_p11, %p2004_p5  ;;  %p1825_p2 = por %p1824_p1, %p1823_p0 }
 0xe77   : > { %p1821_p13 = pneg %p1820_p12 }
 0xe79   : > { %p1826_p3 = pnand %p1825_p2, %p1821_p13 }
 0xeb5   : > { %v1351_v59 = vpop.permute.xlu2 %1350 }
 0xee1   : > { %v1347_v58 = vpop.permute.xlu1 %1346 }
 0xee2   : > { %v1354_v60 = vsel %vm880_vm6, %v1353_v57, %v1347_v58 }
 0xee3   : > { %v1355_v61 = vsel %vm882_vm7, %v1354_v60, %v1351_v59  ;;  %v1756_v59 = vld [vmem:[%s2408_s14 + $0x1] ss:$0 sm:$0xff] }
 0xee4   : > { %1660 = vmatmul.msk.f32.vlgmr.msra.gmra.mxu3 %vm534_vm0, %v1355_v61  ;;  %v1757_v61 = vld [vmem:[%s2409_s15 + $0x1] ss:$0 sm:$0xff] }
 0xf67   : > { %v1386_v63 = vpop.f32.mrf.mxu3 }
 0xf68   : > { %v1387_v0 = vadd.f32 %v1751_v62, %v1386_v63 }
 0xf6a   : > { %v1389_v1 = vadd.f32 %v1387_v0, %v2215_v52  ;;  %v1665_v52 = vld [vmem:[%s2404_s10 + $0x30] sm:$0xff] }
 0xf6b   : > { %1450 = vmatpush.msra.mxu0 %v1665_v52 }
 0xf6c   : > { %v1394_v2 = vsel %vm534_vm0, %v1389_v1, 0.0 }
 0xf6d   : > { %1395 = vadd.xlane.f32.xlu0 %v1394_v2  ;;  %1451 = vmatpush.msra.mxu0 %v1664_v10 }
 0xf6f   : > { %1452 = vmatpush.msra.mxu0 %v1663_v11 }
 0xfe0   : > { %v1396_v3 = vpop.xlane.xlu0 %1395 }
 0xfe1   : > { %v1397_v4 = vmul.f32 %v1396_v3, %v2027_v8 }
 0xfe3   : > { %v1398_v5 = vsub.f32 %v1389_v1, %v1397_v4 }
 0xfe5   : > { %v1399_v6 = vmul.f32 %v1398_v5, %v1398_v5 }
 0xfe7   : > { %v1400_v7 = vsel %vm534_vm0, %v1399_v6, 0.0 }
 0xfe8   : > { %1401 = vadd.xlane.f32.xlu1 %v1400_v7 }
0x105b   : > { %v1402_v15 = vpop.xlane.xlu1 %1401 }
0x105c   : > { %v1403_v16 = vmul.f32 %v1402_v15, %v2027_v8 }
0x105e   : > { %v1404_v18 = vadd.f32 1e-05, %v1403_v16 }
0x1060   : > { %1798 = vrsqrt.f32 %v1404_v18  ;;  %vm1411_vm1 = vweird.f32 %v1404_v18 }
0x1066   : > { %v1799_v20 = vpop.eup %1798 }
0x1067   : > { %v1406_v21 = vmul.f32 %v1799_v20, %v1404_v18  ;;  %vm1412_vm15 = vweird.f32 %v1799_v20 }
0x1068   : > { %vm1413_vm2 = vmor %vm1411_vm1, %vm1412_vm15 }
0x1069   : > { %v1407_v22 = vmul.f32 %v1799_v20, %v1406_v21 }
0x106b   : > { %v1408_v23 = vmul.f32 0.5, %v1407_v22 }
0x106d   : > { %v1409_v24 = vsub.f32 1.5, %v1408_v23 }
0x106f   : > { %v1410_v25 = vmul.f32 %v1799_v20, %v1409_v24 }
0x1071   : > { %v1414_v27 = vsel %vm1413_vm2, %v1799_v20, %v1410_v25 }
0x1072   : > { %v1415_v28 = vmul.f32 %v1414_v27, %v1398_v5 }
0x1074   : > { %v1419_v43 = vmul.f32 %v1752_v26, %v1415_v28 }
0x1076   : > { %v1423_v30 = vadd.f32 %v1753_v29, %v1419_v43 }
0x1078   : > { %1668 = vmatmul.msk.f32.vlgmr.msra.gmra.mxu0 %vm534_vm0, %v1423_v30 }
0x10f5   : > { %v1454_v36 = vpop.f32.mrf.mxu0 }
0x10f6   : > { %v1455_v37 = vadd.f32 %v1754_v35, %v1454_v36 }
0x10f8   : > { %v1457_v38 = vmax.f32 %v1455_v37, 0.0 }
0x10fa   : > { %1678 = vmatmul.msk.f32.vlgmr.msrb.gmra.mxu2 %vm992_vm11, %v1457_v38 }
0x117d   : > { %v1492_v40 = vpop.f32.mrf.mxu2 }
0x117e   : > { %v1493_v41 = vadd.f32 %v1755_v39, %v1492_v40 }
0x1180   : > { %v1495_v42 = vadd.f32 %v1493_v41, %v1423_v30 }
0x1182   : > { %v1500_v44 = vsel %vm534_vm0, %v1495_v42, 0.0 }
0x1183   : > { %1501 = vadd.xlane.f32.xlu2 %v1500_v44 }
0x11f6   : > { %v1502_v45 = vpop.xlane.xlu2 %1501 }
0x11f7   : > { %v1503_v46 = vmul.f32 %v1502_v45, %v2027_v8 }
0x11f9   : > { %v1504_v47 = vsub.f32 %v1495_v42, %v1503_v46 }
0x11fb   : > { %v1505_v48 = vmul.f32 %v1504_v47, %v1504_v47 }
0x11fd   : > { %v1506_v49 = vsel %vm534_vm0, %v1505_v48, 0.0 }
0x11fe   : > { %1507 = vadd.xlane.f32.xlu0 %v1506_v49 }
0x1271   : > { %v1508_v50 = vpop.xlane.xlu0 %1507 }
0x1272   : > { %v1509_v51 = vmul.f32 %v1508_v50, %v2027_v8 }
0x1274   : > { %v1510_v53 = vadd.f32 1e-05, %v1509_v51 }
0x1276   : > { %1800 = vrsqrt.f32 %v1510_v53  ;;  %vm1517_vm4 = vweird.f32 %v1510_v53 }
0x127c   : > { %v1801_v54 = vpop.eup %1800 }
0x127d   : > { %v1512_v55 = vmul.f32 %v1801_v54, %v1510_v53  ;;  %vm1518_vm3 = vweird.f32 %v1801_v54 }
0x127e   : > { %vm1519_vm5 = vmor %vm1517_vm4, %vm1518_vm3 }
0x127f   : > { %v1513_v32 = vmul.f32 %v1801_v54, %v1512_v55 }
0x1281   : > { %v1514_v56 = vmul.f32 0.5, %v1513_v32 }
0x1283   : > { %v1515_v57 = vsub.f32 1.5, %v1514_v56 }
0x1285   : > { %v1516_v58 = vmul.f32 %v1801_v54, %v1515_v57 }
0x1287   : > { %v1520_v8 = vsel %vm1519_vm5, %v1801_v54, %v1516_v58 }
0x1288   : > { %v1521_v60 = vmul.f32 %v1520_v8, %v1504_v47 }
0x128a   : > { %v1525_v62 = vmul.f32 %v1756_v59, %v1521_v60 }
0x128c   : > { %v1529_v63 = vadd.f32 %v1757_v61, %v1525_v62 }
0x128e   : > { %1530 = vst.msk [vmem:[%s523_s2] sm:$0xff] %vm534_vm0, %v1529_v63 }
0x128f   : > { %1829 = shalt.err (!%p1826_p3)
}
0x1290   : > { %1685 = dma.vmem_to_hbm [thread:$0]  (%p2004_p5), %s1545_s25, 128, %s1547_s3, %s1532_s20  }
0x1291 PF: > { %p1691_p4 = scmp.ge.s32.totalorder %s1864_s24, 2  ;;  %s1558_s2 = sand.u32 1, %s1852_s21  }
0x1292   : > { %s1559_s30 = scalar_lea.sflag [#allocation3], %s1558_s2 }
0x1293   : > { %p1688_p7 = pnand %p1691_p4, %p2008_p6 }
0x1295   : > { %p1689_p8 = pneg %p1688_p7 }
0x1297   : > { %1847 = dma.done.wait (%p1689_p8), %s1559_s30, 128  }
0x1298   : > { %1849 = vsyncadd (%p1689_p8), %s1559_s30, 4294967168  ;;  %s2456_s24 = sld [smem:[#allocation6_spill]]  ;;  %s2459_s21 = smov %s1856_s22 }
0x1299   : > { %s2457_s28 = sld [smem:[#allocation5_spill]] }
0x129a   : > { %s2458_s23 = sld [smem:[#allocation7_spill]] }
0x129e   : > { %p26_p9 = scmp.ge.s32.totalorder %s2456_s24, 4  }
0x129f   : > { %s2460_s22 = smov %s2457_s28 }
0x12a0   :  { %28 = sbr.rel (!%p26_p9) target bundleno = 8 (0x8), region = 134 }
0x12a5   :  { %1565 = vsyncpa [#allocation3], 1 }
0x12a6   :  { %1567 = vsyncpa [#allocation3 + $0x1], 1 }

</bundles_post_ra>
